<compile_context>
chip_gen: v7x
topology: tpu7x:2x2x1
jax: 0.10.0
libtpu: 0.0.40
codegen_flags: <defaults>
</compile_context>

<pallas_src>
import math
import functools

import jax
import jax.numpy as jnp
from jax.experimental import pallas as pl
from jax.experimental.pallas import tpu as pltpu


def _make_kernel(nhead: int, head_dim: int, d_model: int, eps: float):
    H, hd, E = nhead, head_dim, d_model
    f32, bf16 = jnp.float32, jnp.bfloat16

    def kernel(tgt_ref, mem_ref,
               wq_ref, bq_ref, wkv_ref, bkv_ref, wo_ref, bo_ref,
               w1_ref, b1_ref, w2_ref, b2_ref,
               g1_ref, be1_ref, g2_ref, be2_ref,
               out_ref, kv_sc):
        # --- K/V projection: computed once per batch (first L-tile), cached in VMEM (bf16) ---
        @pl.when(pl.program_id(1) == 0)
        def _():
            m = mem_ref[...].astype(bf16)                                   # (S, E)
            kv = jnp.dot(m, wkv_ref[...], preferred_element_type=f32) + bkv_ref[...]
            kv_sc[...] = kv.astype(bf16)                                    # (S, 2E)

        # --- Q projection (scale pre-folded into wq/bq by the wrapper) ---
        x0 = tgt_ref[...].astype(f32)                                       # (TL, E), residual in f32
        q = jnp.dot(x0.astype(bf16), wq_ref[...], preferred_element_type=f32) + bq_ref[...]
        qb = q.astype(bf16)

        kv = kv_sc[...]                                                     # (S, 2E) bf16
        k = kv[:, :E]
        v = kv[:, E:]

        # --- multi-head cross attention (per-head NT dot_general, no explicit transposes) ---
        head_outs = []
        for h in range(H):
            lo = h * hd
            qh = qb[:, lo:lo + hd]                                          # (TL, hd)
            kh = k[:, lo:lo + hd]                                           # (S, hd)
            vh = v[:, lo:lo + hd]                                           # (S, hd)
            s = jax.lax.dot_general(qh, kh, (((1,), (1,)), ((), ())),
                                    preferred_element_type=f32)             # (TL, S) = q k^T
            s = s - jnp.max(s, axis=-1, keepdims=True)
            p = jnp.exp(s)
            p = p * pl.reciprocal(jnp.sum(p, axis=-1, keepdims=True), approx=True)
            head_outs.append(jnp.dot(p.astype(bf16), vh, preferred_element_type=f32))
        attn = jnp.concatenate(head_outs, axis=-1)                          # (TL, E)
        attn = jnp.dot(attn.astype(bf16), wo_ref[...],
                       preferred_element_type=f32) + bo_ref[...]

        # --- residual + LayerNorm1 (post-norm, f32 statistics) ---
        x = x0 + attn
        mu = jnp.mean(x, axis=-1, keepdims=True)
        var = jnp.mean(jnp.square(x - mu), axis=-1, keepdims=True)
        x = (x - mu) * jax.lax.rsqrt(var + eps) * g1_ref[...] + be1_ref[...]

        # --- feed-forward: Linear -> ReLU -> Linear (bf16 MXU, f32 accum) ---
        h1 = jnp.dot(x.astype(bf16), w1_ref[...], preferred_element_type=f32) + b1_ref[...]
        h1 = jnp.maximum(h1, 0.0)
        h2 = jnp.dot(h1.astype(bf16), w2_ref[...], preferred_element_type=f32) + b2_ref[...]

        # --- residual + LayerNorm2 ---
        y = x + h2
        mu2 = jnp.mean(y, axis=-1, keepdims=True)
        var2 = jnp.mean(jnp.square(y - mu2), axis=-1, keepdims=True)
        y = (y - mu2) * jax.lax.rsqrt(var2 + eps) * g2_ref[...] + be2_ref[...]

        out_ref[...] = y.astype(out_ref.dtype)

    return kernel


def guided_attention_block(tgt, memory, params, *, nhead: int, eps: float = 1e-5,
                           tile_l: int = 256):
    """tgt: (L, B, E), memory: (S, B, E)  ->  (L, B, E)   (PyTorch seq-first convention)."""
    L, B, E = tgt.shape
    S = memory.shape[0]
    assert E % nhead == 0
    hd = E // nhead

    TILE_L = min(tile_l, L)
    num_lt = -(-L // TILE_L)
    Lp = num_lt * TILE_L

    kernel = _make_kernel(nhead, hd, E, eps)

    lane_ok = (E % 128 == 0)
    if lane_ok:
        # Seq-first layout kept: batch b is a 128-aligned column block of the flat
        # (L, B*E) view, so no HBM transposes are needed (reshapes are free).
        tgt2 = tgt.reshape(L, B * E)
        mem2 = memory.reshape(S, B * E)
        if Lp != L:
            tgt2 = jnp.pad(tgt2, ((0, Lp - L), (0, 0)))
        tgt_spec = pl.BlockSpec((TILE_L, E), lambda b, lt: (lt, b))
        mem_spec = pl.BlockSpec((S, E), lambda b, lt: (0, b))
        out_spec = pl.BlockSpec((TILE_L, E), lambda b, lt: (lt, b))
        out_shape = jax.ShapeDtypeStruct((Lp, B * E), tgt.dtype)
        act_args = (tgt2, mem2)
    else:
        # Fallback for d_model not a multiple of 128: batch-first copies (strided
        # sub-128 lane blocks of the seq-first layout are not relied upon here).
        tgt_b = jnp.transpose(tgt, (1, 0, 2))
        mem_b = jnp.transpose(memory, (1, 0, 2))
        if Lp != L:
            tgt_b = jnp.pad(tgt_b, ((0, 0), (0, Lp - L), (0, 0)))
        tgt_spec = pl.BlockSpec((None, TILE_L, E), lambda b, lt: (b, lt, 0))
        mem_spec = pl.BlockSpec((None, S, E), lambda b, lt: (b, 0, 0))
        out_spec = pl.BlockSpec((None, TILE_L, E), lambda b, lt: (b, lt, 0))
        out_shape = jax.ShapeDtypeStruct((B, Lp, E), tgt.dtype)
        act_args = (tgt_b, mem_b)

    def full_spec(a):
        n = a.ndim
        return pl.BlockSpec(a.shape, lambda b, lt: (0,) * n)

    w = params
    weight_args = (w["wq"], w["bq"], w["wkv"], w["bkv"], w["wo"], w["bo"],
                   w["w1"], w["b1"], w["w2"], w["b2"],
                   w["g1"], w["be1"], w["g2"], w["be2"])
    in_specs = [tgt_spec, mem_spec] + [full_spec(a) for a in weight_args]

    out = pl.pallas_call(
        kernel,
        out_shape=out_shape,
        grid=(B, num_lt),
        in_specs=in_specs,
        out_specs=out_spec,
        scratch_shapes=[pltpu.VMEM((S, 2 * E), jnp.bfloat16)],   # cached fused K|V per batch
        compiler_params=pltpu.CompilerParams(
            dimension_semantics=("parallel", "arbitrary"),
            vmem_limit_bytes=64 * 1024 * 1024,
        ),
    )(*act_args, *weight_args)

    if lane_ok:
        return out[:L].reshape(L, B, E)
    else:
        return jnp.transpose(out[:, :L, :], (1, 0, 2))


def init_params(key, d_model: int, nhead: int, dim_feedforward: int):
    """Deterministic synthetic parameter init (PyTorch-like, pre-transposed so x @ W + b)."""
    ks = jax.random.split(key, 10)
    s = 0.05
    return {
        "wq": s * jax.random.normal(ks[0], (d_model, d_model), jnp.float32),
        "wk": s * jax.random.normal(ks[1], (d_model, d_model), jnp.float32),
        "wv": s * jax.random.normal(ks[2], (d_model, d_model), jnp.float32),
        "bq": s * jax.random.normal(ks[3], (1, d_model), jnp.float32),
        "bk": s * jax.random.normal(ks[4], (1, d_model), jnp.float32),
        "bv": s * jax.random.normal(ks[5], (1, d_model), jnp.float32),
        "wo": s * jax.random.normal(ks[6], (d_model, d_model), jnp.float32),
        "bo": jnp.zeros((1, d_model), jnp.float32),
        "w1": s * jax.random.normal(ks[7], (d_model, dim_feedforward), jnp.float32),
        "b1": s * jax.random.normal(ks[8], (1, dim_feedforward), jnp.float32),
        "w2": s * jax.random.normal(ks[9], (dim_feedforward, d_model), jnp.float32),
        "b2": jnp.zeros((1, d_model), jnp.float32),
        "g1": jnp.ones((1, d_model), jnp.float32),
        "be1": jnp.zeros((1, d_model), jnp.float32),
        "g2": jnp.ones((1, d_model), jnp.float32),
        "be2": jnp.zeros((1, d_model), jnp.float32),
    }


def prepare_params(params, nhead: int):
    """Kernel-ready params: bf16 weights, fused [wk|wv], 1/sqrt(head_dim) folded into Q."""
    E = params["wq"].shape[0]
    hd = E // nhead
    scale = 1.0 / math.sqrt(hd)
    f32, bf16 = jnp.float32, jnp.bfloat16
    return {
        "wq": (params["wq"] * scale).astype(bf16),
        "bq": (params["bq"] * scale).astype(f32),
        "wkv": jnp.concatenate([params["wk"], params["wv"]], axis=1).astype(bf16),
        "bkv": jnp.concatenate([params["bk"], params["bv"]], axis=1).astype(f32),
        "wo": params["wo"].astype(bf16),
        "bo": params["bo"].astype(f32),
        "w1": params["w1"].astype(bf16),
        "b1": params["b1"].astype(f32),
        "w2": params["w2"].astype(bf16),
        "b2": params["b2"].astype(f32),
        "g1": params["g1"].astype(f32),
        "be1": params["be1"].astype(f32),
        "g2": params["g2"].astype(f32),
        "be2": params["be2"].astype(f32),
    }


if __name__ == "__main__":
    # Small deterministic example (PyTorch seq-first shapes). d_model=128 exercises the
    # transpose-free (lane-aligned) input path.
    d_model = 128
    nhead = 4
    dim_feedforward = 256
    L, S, B = 16, 8, 2

    key = jax.random.PRNGKey(0)
    k_tgt, k_mem, k_par = jax.random.split(key, 3)

    tgt = jax.random.normal(k_tgt, (L, B, d_model), jnp.float32)
    memory = jax.random.normal(k_mem, (S, B, d_model), jnp.float32)
    params = prepare_params(init_params(k_par, d_model, nhead, dim_feedforward), nhead)

    fn = jax.jit(functools.partial(guided_attention_block, nhead=nhead, eps=1e-5))
    out = fn(tgt, memory, params)
    jax.block_until_ready(out)

    assert out.shape == (L, B, d_model)
    assert bool(jnp.all(jnp.isfinite(out)))
    print("KERNEL_OK")
</pallas_src>

<mosaic_0001>
module attributes {stable_mosaic.version = 11 : i64} {
  func.func @kernel(%arg0: i32, %arg1: i32, %arg2: memref<16x128xf32, #tpu.memory_space<vmem>>, %arg3: memref<8x128xf32, #tpu.memory_space<vmem>>, %arg4: memref<128x128xbf16, #tpu.memory_space<vmem>>, %arg5: memref<1x128xf32, #tpu.memory_space<vmem>>, %arg6: memref<128x256xbf16, #tpu.memory_space<vmem>>, %arg7: memref<1x256xf32, #tpu.memory_space<vmem>>, %arg8: memref<128x128xbf16, #tpu.memory_space<vmem>>, %arg9: memref<1x128xf32, #tpu.memory_space<vmem>>, %arg10: memref<128x256xbf16, #tpu.memory_space<vmem>>, %arg11: memref<1x256xf32, #tpu.memory_space<vmem>>, %arg12: memref<256x128xbf16, #tpu.memory_space<vmem>>, %arg13: memref<1x128xf32, #tpu.memory_space<vmem>>, %arg14: memref<1x128xf32, #tpu.memory_space<vmem>>, %arg15: memref<1x128xf32, #tpu.memory_space<vmem>>, %arg16: memref<1x128xf32, #tpu.memory_space<vmem>>, %arg17: memref<1x128xf32, #tpu.memory_space<vmem>>, %arg18: memref<16x128xf32, #tpu.memory_space<vmem>>, %arg19: memref<8x256xbf16, #tpu.memory_space<vmem>>) attributes {dimension_semantics = [#tpu.dimension_semantics<parallel>, #tpu.dimension_semantics<arbitrary>], iteration_bounds = array<i64: 2, 1>, scalar_prefetch = 0 : i64, scratch_operands = 1 : i64, tpu.core_type = #tpu.core_type<tc>, window_params = [{transform_indices = @transform_0, window_bounds = array<i64: 16, 128>}, {transform_indices = @transform_1, window_bounds = array<i64: 8, 128>}, {pipeline_mode = #tpu.pipeline_mode<synchronous>, transform_indices = @transform_2, window_bounds = array<i64: 128, 128>}, {pipeline_mode = #tpu.pipeline_mode<synchronous>, transform_indices = @transform_3, window_bounds = array<i64: 1, 128>}, {pipeline_mode = #tpu.pipeline_mode<synchronous>, transform_indices = @transform_4, window_bounds = array<i64: 128, 256>}, {pipeline_mode = #tpu.pipeline_mode<synchronous>, transform_indices = @transform_5, window_bounds = array<i64: 1, 256>}, {pipeline_mode = #tpu.pipeline_mode<synchronous>, transform_indices = @transform_6, window_bounds = array<i64: 128, 128>}, {pipeline_mode = #tpu.pipeline_mode<synchronous>, transform_indices = @transform_7, window_bounds = array<i64: 1, 128>}, {pipeline_mode = #tpu.pipeline_mode<synchronous>, transform_indices = @transform_8, window_bounds = array<i64: 128, 256>}, {pipeline_mode = #tpu.pipeline_mode<synchronous>, transform_indices = @transform_9, window_bounds = array<i64: 1, 256>}, {pipeline_mode = #tpu.pipeline_mode<synchronous>, transform_indices = @transform_10, window_bounds = array<i64: 256, 128>}, {pipeline_mode = #tpu.pipeline_mode<synchronous>, transform_indices = @transform_11, window_bounds = array<i64: 1, 128>}, {pipeline_mode = #tpu.pipeline_mode<synchronous>, transform_indices = @transform_12, window_bounds = array<i64: 1, 128>}, {pipeline_mode = #tpu.pipeline_mode<synchronous>, transform_indices = @transform_13, window_bounds = array<i64: 1, 128>}, {pipeline_mode = #tpu.pipeline_mode<synchronous>, transform_indices = @transform_14, window_bounds = array<i64: 1, 128>}, {pipeline_mode = #tpu.pipeline_mode<synchronous>, transform_indices = @transform_15, window_bounds = array<i64: 1, 128>}, {transform_indices = @transform_16, window_bounds = array<i64: 16, 128>}]} {
    %c0_i32 = arith.constant 0 : i32
    %0 = arith.cmpi eq, %arg1, %c0_i32 : i32
    %1 = arith.extui %0 : i1 to i32
    %c0_i32_0 = arith.constant 0 : i32
    %2 = arith.cmpi ne, %1, %c0_i32_0 : i32
    scf.if %2 {
      %c0_60 = arith.constant 0 : index
      %c0_61 = arith.constant 0 : index
      %150 = vector.load %arg3[%c0_60, %c0_61] : memref<8x128xf32, #tpu.memory_space<vmem>>, vector<8x128xf32>
      %151 = arith.truncf %150 : vector<8x128xf32> to vector<8x128xbf16>
      %c0_62 = arith.constant 0 : index
      %c0_63 = arith.constant 0 : index
      %152 = vector.load %arg6[%c0_62, %c0_63] : memref<128x256xbf16, #tpu.memory_space<vmem>>, vector<128x256xbf16>
      %cst_64 = arith.constant dense<0.000000e+00> : vector<8x256xf32>
      %153 = tpu.matmul %151, %152, %cst_64 {dimension_numbers = #tpu.dot_dimension_numbers<[1], [0], [0], [1], [0, 0, 1, 1], [], []>} : vector<8x128xbf16>, vector<128x256xbf16>, vector<8x256xf32> -> vector<8x256xf32>
      %c0_65 = arith.constant 0 : index
      %c0_66 = arith.constant 0 : index
      %154 = vector.load %arg7[%c0_65, %c0_66] : memref<1x256xf32, #tpu.memory_space<vmem>>, vector<1x256xf32>
      %155 = vector.broadcast %154 : vector<1x256xf32> to vector<8x256xf32>
      %156 = arith.addf %153, %155 : vector<8x256xf32>
      %157 = arith.truncf %156 : vector<8x256xf32> to vector<8x256xbf16>
      %c0_67 = arith.constant 0 : index
      %c0_68 = arith.constant 0 : index
      %158 = vector.load %arg19[%c0_67, %c0_68] : memref<8x256xbf16, #tpu.memory_space<vmem>>, vector<8x256xbf16>
      tpu.vector_store %arg19[%c0_67, %c0_68], %157 {strides = array<i32>} : memref<8x256xbf16, #tpu.memory_space<vmem>>, vector<8x256xbf16>,
    } else {
    }
    %c0 = arith.constant 0 : index
    %c0_1 = arith.constant 0 : index
    %3 = vector.load %arg2[%c0, %c0_1] : memref<16x128xf32, #tpu.memory_space<vmem>>, vector<16x128xf32>
    %4 = arith.truncf %3 : vector<16x128xf32> to vector<16x128xbf16>
    %c0_2 = arith.constant 0 : index
    %c0_3 = arith.constant 0 : index
    %5 = vector.load %arg4[%c0_2, %c0_3] : memref<128x128xbf16, #tpu.memory_space<vmem>>, vector<128x128xbf16>
    %cst = arith.constant dense<0.000000e+00> : vector<16x128xf32>
    %6 = tpu.matmul %4, %5, %cst {dimension_numbers = #tpu.dot_dimension_numbers<[1], [0], [0], [1], [0, 0, 1, 1], [], []>} : vector<16x128xbf16>, vector<128x128xbf16>, vector<16x128xf32> -> vector<16x128xf32>
    %c0_4 = arith.constant 0 : index
    %c0_5 = arith.constant 0 : index
    %7 = vector.load %arg5[%c0_4, %c0_5] : memref<1x128xf32, #tpu.memory_space<vmem>>, vector<1x128xf32>
    %8 = vector.broadcast %7 : vector<1x128xf32> to vector<16x128xf32>
    %9 = arith.addf %6, %8 : vector<16x128xf32>
    %10 = arith.truncf %9 : vector<16x128xf32> to vector<16x128xbf16>
    %c0_6 = arith.constant 0 : index
    %c0_7 = arith.constant 0 : index
    %11 = vector.load %arg19[%c0_6, %c0_7] : memref<8x256xbf16, #tpu.memory_space<vmem>>, vector<8x256xbf16>
    %12 = vector.extract_strided_slice %11 {offsets = [0, 0], sizes = [8, 128], strides = [1, 1]} : vector<8x256xbf16> to vector<8x128xbf16>
    %13 = vector.extract_strided_slice %11 {offsets = [0, 128], sizes = [8, 128], strides = [1, 1]} : vector<8x256xbf16> to vector<8x128xbf16>
    %14 = vector.extract_strided_slice %10 {offsets = [0, 0], sizes = [16, 32], strides = [1, 1]} : vector<16x128xbf16> to vector<16x32xbf16>
    %15 = vector.extract_strided_slice %12 {offsets = [0, 0], sizes = [8, 32], strides = [1, 1]} : vector<8x128xbf16> to vector<8x32xbf16>
    %16 = vector.extract_strided_slice %13 {offsets = [0, 0], sizes = [8, 32], strides = [1, 1]} : vector<8x128xbf16> to vector<8x32xbf16>
    %cst_8 = arith.constant dense<0.000000e+00> : vector<16x8xf32>
    %17 = tpu.matmul %14, %15, %cst_8 {dimension_numbers = #tpu.dot_dimension_numbers<[1], [1], [0], [0], [0, 0, 1, 0], [], []>} : vector<16x32xbf16>, vector<8x32xbf16>, vector<16x8xf32> -> vector<16x8xf32>
    %cst_9 = arith.constant dense<0xFF800000> : vector<16xf32>
    %18 = vector.multi_reduction <maximumf>, %17, %cst_9 [1] : vector<16x8xf32> to vector<16xf32>
    %19 = vector.shape_cast %18 : vector<16xf32> to vector<16x1xf32>
    %20 = vector.broadcast %19 : vector<16x1xf32> to vector<16x8xf32>
    %21 = arith.subf %17, %20 : vector<16x8xf32>
    %22 = math.exp %21 : vector<16x8xf32>
    %cst_10 = arith.constant dense<0.000000e+00> : vector<16xf32>
    %23 = vector.multi_reduction <add>, %22, %cst_10 [1] : vector<16x8xf32> to vector<16xf32>
    %24 = vector.shape_cast %23 : vector<16xf32> to vector<16x1xf32>
    %25 = tpu.reciprocal %24 {approx = true} : vector<16x1xf32> -> vector<16x1xf32>
    %26 = vector.broadcast %25 : vector<16x1xf32> to vector<16x8xf32>
    %27 = arith.mulf %22, %26 : vector<16x8xf32>
    %28 = arith.truncf %27 : vector<16x8xf32> to vector<16x8xbf16>
    %cst_11 = arith.constant dense<0.000000e+00> : vector<16x32xf32>
    %29 = tpu.matmul %28, %16, %cst_11 {dimension_numbers = #tpu.dot_dimension_numbers<[1], [0], [0], [1], [0, 0, 1, 1], [], []>} : vector<16x8xbf16>, vector<8x32xbf16>, vector<16x32xf32> -> vector<16x32xf32>
    %30 = vector.extract_strided_slice %10 {offsets = [0, 32], sizes = [16, 32], strides = [1, 1]} : vector<16x128xbf16> to vector<16x32xbf16>
    %31 = vector.extract_strided_slice %12 {offsets = [0, 32], sizes = [8, 32], strides = [1, 1]} : vector<8x128xbf16> to vector<8x32xbf16>
    %32 = vector.extract_strided_slice %13 {offsets = [0, 32], sizes = [8, 32], strides = [1, 1]} : vector<8x128xbf16> to vector<8x32xbf16>
    %cst_12 = arith.constant dense<0.000000e+00> : vector<16x8xf32>
    %33 = tpu.matmul %30, %31, %cst_12 {dimension_numbers = #tpu.dot_dimension_numbers<[1], [1], [0], [0], [0, 0, 1, 0], [], []>} : vector<16x32xbf16>, vector<8x32xbf16>, vector<16x8xf32> -> vector<16x8xf32>
    %cst_13 = arith.constant dense<0xFF800000> : vector<16xf32>
    %34 = vector.multi_reduction <maximumf>, %33, %cst_13 [1] : vector<16x8xf32> to vector<16xf32>
    %35 = vector.shape_cast %34 : vector<16xf32> to vector<16x1xf32>
    %36 = vector.broadcast %35 : vector<16x1xf32> to vector<16x8xf32>
    %37 = arith.subf %33, %36 : vector<16x8xf32>
    %38 = math.exp %37 : vector<16x8xf32>
    %cst_14 = arith.constant dense<0.000000e+00> : vector<16xf32>
    %39 = vector.multi_reduction <add>, %38, %cst_14 [1] : vector<16x8xf32> to vector<16xf32>
    %40 = vector.shape_cast %39 : vector<16xf32> to vector<16x1xf32>
    %41 = tpu.reciprocal %40 {approx = true} : vector<16x1xf32> -> vector<16x1xf32>
    %42 = vector.broadcast %41 : vector<16x1xf32> to vector<16x8xf32>
    %43 = arith.mulf %38, %42 : vector<16x8xf32>
    %44 = arith.truncf %43 : vector<16x8xf32> to vector<16x8xbf16>
    %cst_15 = arith.constant dense<0.000000e+00> : vector<16x32xf32>
    %45 = tpu.matmul %44, %32, %cst_15 {dimension_numbers = #tpu.dot_dimension_numbers<[1], [0], [0], [1], [0, 0, 1, 1], [], []>} : vector<16x8xbf16>, vector<8x32xbf16>, vector<16x32xf32> -> vector<16x32xf32>
    %46 = vector.extract_strided_slice %10 {offsets = [0, 64], sizes = [16, 32], strides = [1, 1]} : vector<16x128xbf16> to vector<16x32xbf16>
    %47 = vector.extract_strided_slice %12 {offsets = [0, 64], sizes = [8, 32], strides = [1, 1]} : vector<8x128xbf16> to vector<8x32xbf16>
    %48 = vector.extract_strided_slice %13 {offsets = [0, 64], sizes = [8, 32], strides = [1, 1]} : vector<8x128xbf16> to vector<8x32xbf16>
    %cst_16 = arith.constant dense<0.000000e+00> : vector<16x8xf32>
    %49 = tpu.matmul %46, %47, %cst_16 {dimension_numbers = #tpu.dot_dimension_numbers<[1], [1], [0], [0], [0, 0, 1, 0], [], []>} : vector<16x32xbf16>, vector<8x32xbf16>, vector<16x8xf32> -> vector<16x8xf32>
    %cst_17 = arith.constant dense<0xFF800000> : vector<16xf32>
    %50 = vector.multi_reduction <maximumf>, %49, %cst_17 [1] : vector<16x8xf32> to vector<16xf32>
    %51 = vector.shape_cast %50 : vector<16xf32> to vector<16x1xf32>
    %52 = vector.broadcast %51 : vector<16x1xf32> to vector<16x8xf32>
    %53 = arith.subf %49, %52 : vector<16x8xf32>
    %54 = math.exp %53 : vector<16x8xf32>
    %cst_18 = arith.constant dense<0.000000e+00> : vector<16xf32>
    %55 = vector.multi_reduction <add>, %54, %cst_18 [1] : vector<16x8xf32> to vector<16xf32>
    %56 = vector.shape_cast %55 : vector<16xf32> to vector<16x1xf32>
    %57 = tpu.reciprocal %56 {approx = true} : vector<16x1xf32> -> vector<16x1xf32>
    %58 = vector.broadcast %57 : vector<16x1xf32> to vector<16x8xf32>
    %59 = arith.mulf %54, %58 : vector<16x8xf32>
    %60 = arith.truncf %59 : vector<16x8xf32> to vector<16x8xbf16>
    %cst_19 = arith.constant dense<0.000000e+00> : vector<16x32xf32>
    %61 = tpu.matmul %60, %48, %cst_19 {dimension_numbers = #tpu.dot_dimension_numbers<[1], [0], [0], [1], [0, 0, 1, 1], [], []>} : vector<16x8xbf16>, vector<8x32xbf16>, vector<16x32xf32> -> vector<16x32xf32>
    %62 = vector.extract_strided_slice %10 {offsets = [0, 96], sizes = [16, 32], strides = [1, 1]} : vector<16x128xbf16> to vector<16x32xbf16>
    %63 = vector.extract_strided_slice %12 {offsets = [0, 96], sizes = [8, 32], strides = [1, 1]} : vector<8x128xbf16> to vector<8x32xbf16>
    %64 = vector.extract_strided_slice %13 {offsets = [0, 96], sizes = [8, 32], strides = [1, 1]} : vector<8x128xbf16> to vector<8x32xbf16>
    %cst_20 = arith.constant dense<0.000000e+00> : vector<16x8xf32>
    %65 = tpu.matmul %62, %63, %cst_20 {dimension_numbers = #tpu.dot_dimension_numbers<[1], [1], [0], [0], [0, 0, 1, 0], [], []>} : vector<16x32xbf16>, vector<8x32xbf16>, vector<16x8xf32> -> vector<16x8xf32>
    %cst_21 = arith.constant dense<0xFF800000> : vector<16xf32>
    %66 = vector.multi_reduction <maximumf>, %65, %cst_21 [1] : vector<16x8xf32> to vector<16xf32>
    %67 = vector.shape_cast %66 : vector<16xf32> to vector<16x1xf32>
    %68 = vector.broadcast %67 : vector<16x1xf32> to vector<16x8xf32>
    %69 = arith.subf %65, %68 : vector<16x8xf32>
    %70 = math.exp %69 : vector<16x8xf32>
    %cst_22 = arith.constant dense<0.000000e+00> : vector<16xf32>
    %71 = vector.multi_reduction <add>, %70, %cst_22 [1] : vector<16x8xf32> to vector<16xf32>
    %72 = vector.shape_cast %71 : vector<16xf32> to vector<16x1xf32>
    %73 = tpu.reciprocal %72 {approx = true} : vector<16x1xf32> -> vector<16x1xf32>
    %74 = vector.broadcast %73 : vector<16x1xf32> to vector<16x8xf32>
    %75 = arith.mulf %70, %74 : vector<16x8xf32>
    %76 = arith.truncf %75 : vector<16x8xf32> to vector<16x8xbf16>
    %cst_23 = arith.constant dense<0.000000e+00> : vector<16x32xf32>
    %77 = tpu.matmul %76, %64, %cst_23 {dimension_numbers = #tpu.dot_dimension_numbers<[1], [0], [0], [1], [0, 0, 1, 1], [], []>} : vector<16x8xbf16>, vector<8x32xbf16>, vector<16x32xf32> -> vector<16x32xf32>
    %78 = tpu.concatenate %29, %45, %61, %77 in 1 : vector<16x32xf32>, vector<16x32xf32>, vector<16x32xf32>, vector<16x32xf32> -> vector<16x128xf32>
    %79 = arith.truncf %78 : vector<16x128xf32> to vector<16x128xbf16>
    %c0_24 = arith.constant 0 : index
    %c0_25 = arith.constant 0 : index
    %80 = vector.load %arg8[%c0_24, %c0_25] : memref<128x128xbf16, #tpu.memory_space<vmem>>, vector<128x128xbf16>
    %cst_26 = arith.constant dense<0.000000e+00> : vector<16x128xf32>
    %81 = tpu.matmul %79, %80, %cst_26 {dimension_numbers = #tpu.dot_dimension_numbers<[1], [0], [0], [1], [0, 0, 1, 1], [], []>} : vector<16x128xbf16>, vector<128x128xbf16>, vector<16x128xf32> -> vector<16x128xf32>
    %c0_27 = arith.constant 0 : index
    %c0_28 = arith.constant 0 : index
    %82 = vector.load %arg9[%c0_27, %c0_28] : memref<1x128xf32, #tpu.memory_space<vmem>>, vector<1x128xf32>
    %83 = vector.broadcast %82 : vector<1x128xf32> to vector<16x128xf32>
    %84 = arith.addf %81, %83 : vector<16x128xf32>
    %85 = arith.addf %3, %84 : vector<16x128xf32>
    %cst_29 = arith.constant dense<0.000000e+00> : vector<16xf32>
    %86 = vector.multi_reduction <add>, %85, %cst_29 [1] : vector<16x128xf32> to vector<16xf32>
    %87 = vector.shape_cast %86 : vector<16xf32> to vector<16x1xf32>
    %cst_30 = arith.constant 1.280000e+02 : f32
    %88 = vector.broadcast %cst_30 : f32 to vector<16x1xf32>
    %89 = arith.divf %87, %88 : vector<16x1xf32>
    %90 = vector.broadcast %89 : vector<16x1xf32> to vector<16x128xf32>
    %91 = arith.subf %85, %90 : vector<16x128xf32>
    %92 = arith.mulf %91, %91 : vector<16x128xf32>
    %cst_31 = arith.constant dense<0.000000e+00> : vector<16xf32>
    %93 = vector.multi_reduction <add>, %92, %cst_31 [1] : vector<16x128xf32> to vector<16xf32>
    %94 = vector.shape_cast %93 : vector<16xf32> to vector<16x1xf32>
    %cst_32 = arith.constant 1.280000e+02 : f32
    %95 = vector.broadcast %cst_32 : f32 to vector<16x1xf32>
    %96 = arith.divf %94, %95 : vector<16x1xf32>
    %97 = vector.broadcast %89 : vector<16x1xf32> to vector<16x128xf32>
    %98 = arith.subf %85, %97 : vector<16x128xf32>
    %cst_33 = arith.constant 9.99999974E-6 : f32
    %99 = vector.broadcast %cst_33 : f32 to vector<16x1xf32>
    %100 = arith.addf %96, %99 : vector<16x1xf32>
    %101 = math.rsqrt %100 : vector<16x1xf32>
    %102 = vector.broadcast %101 : vector<16x1xf32> to vector<16x128xf32>
    %103 = arith.mulf %98, %102 : vector<16x128xf32>
    %c0_34 = arith.constant 0 : index
    %c0_35 = arith.constant 0 : index
    %104 = vector.load %arg14[%c0_34, %c0_35] : memref<1x128xf32, #tpu.memory_space<vmem>>, vector<1x128xf32>
    %105 = vector.broadcast %104 : vector<1x128xf32> to vector<16x128xf32>
    %106 = arith.mulf %103, %105 : vector<16x128xf32>
    %c0_36 = arith.constant 0 : index
    %c0_37 = arith.constant 0 : index
    %107 = vector.load %arg15[%c0_36, %c0_37] : memref<1x128xf32, #tpu.memory_space<vmem>>, vector<1x128xf32>
    %108 = vector.broadcast %107 : vector<1x128xf32> to vector<16x128xf32>
    %109 = arith.addf %106, %108 : vector<16x128xf32>
    %110 = arith.truncf %109 : vector<16x128xf32> to vector<16x128xbf16>
    %c0_38 = arith.constant 0 : index
    %c0_39 = arith.constant 0 : index
    %111 = vector.load %arg10[%c0_38, %c0_39] : memref<128x256xbf16, #tpu.memory_space<vmem>>, vector<128x256xbf16>
    %cst_40 = arith.constant dense<0.000000e+00> : vector<16x256xf32>
    %112 = tpu.matmul %110, %111, %cst_40 {dimension_numbers = #tpu.dot_dimension_numbers<[1], [0], [0], [1], [0, 0, 1, 1], [], []>} : vector<16x128xbf16>, vector<128x256xbf16>, vector<16x256xf32> -> vector<16x256xf32>
    %c0_41 = arith.constant 0 : index
    %c0_42 = arith.constant 0 : index
    %113 = vector.load %arg11[%c0_41, %c0_42] : memref<1x256xf32, #tpu.memory_space<vmem>>, vector<1x256xf32>
    %114 = vector.broadcast %113 : vector<1x256xf32> to vector<16x256xf32>
    %115 = arith.addf %112, %114 : vector<16x256xf32>
    %cst_43 = arith.constant 0.000000e+00 : f32
    %116 = vector.broadcast %cst_43 : f32 to vector<16x256xf32>
    %117 = arith.maximumf %115, %116 : vector<16x256xf32>
    %118 = arith.truncf %117 : vector<16x256xf32> to vector<16x256xbf16>
    %c0_44 = arith.constant 0 : index
    %c0_45 = arith.constant 0 : index
    %119 = vector.load %arg12[%c0_44, %c0_45] : memref<256x128xbf16, #tpu.memory_space<vmem>>, vector<256x128xbf16>
    %cst_46 = arith.constant dense<0.000000e+00> : vector<16x128xf32>
    %120 = tpu.matmul %118, %119, %cst_46 {dimension_numbers = #tpu.dot_dimension_numbers<[1], [0], [0], [1], [0, 0, 1, 1], [], []>} : vector<16x256xbf16>, vector<256x128xbf16>, vector<16x128xf32> -> vector<16x128xf32>
    %c0_47 = arith.constant 0 : index
    %c0_48 = arith.constant 0 : index
    %121 = vector.load %arg13[%c0_47, %c0_48] : memref<1x128xf32, #tpu.memory_space<vmem>>, vector<1x128xf32>
    %122 = vector.broadcast %121 : vector<1x128xf32> to vector<16x128xf32>
    %123 = arith.addf %120, %122 : vector<16x128xf32>
    %124 = arith.addf %109, %123 : vector<16x128xf32>
    %cst_49 = arith.constant dense<0.000000e+00> : vector<16xf32>
    %125 = vector.multi_reduction <add>, %124, %cst_49 [1] : vector<16x128xf32> to vector<16xf32>
    %126 = vector.shape_cast %125 : vector<16xf32> to vector<16x1xf32>
    %cst_50 = arith.constant 1.280000e+02 : f32
    %127 = vector.broadcast %cst_50 : f32 to vector<16x1xf32>
    %128 = arith.divf %126, %127 : vector<16x1xf32>
    %129 = vector.broadcast %128 : vector<16x1xf32> to vector<16x128xf32>
    %130 = arith.subf %124, %129 : vector<16x128xf32>
    %131 = arith.mulf %130, %130 : vector<16x128xf32>
    %cst_51 = arith.constant dense<0.000000e+00> : vector<16xf32>
    %132 = vector.multi_reduction <add>, %131, %cst_51 [1] : vector<16x128xf32> to vector<16xf32>
    %133 = vector.shape_cast %132 : vector<16xf32> to vector<16x1xf32>
    %cst_52 = arith.constant 1.280000e+02 : f32
    %134 = vector.broadcast %cst_52 : f32 to vector<16x1xf32>
    %135 = arith.divf %133, %134 : vector<16x1xf32>
    %136 = vector.broadcast %128 : vector<16x1xf32> to vector<16x128xf32>
    %137 = arith.subf %124, %136 : vector<16x128xf32>
    %cst_53 = arith.constant 9.99999974E-6 : f32
    %138 = vector.broadcast %cst_53 : f32 to vector<16x1xf32>
    %139 = arith.addf %135, %138 : vector<16x1xf32>
    %140 = math.rsqrt %139 : vector<16x1xf32>
    %141 = vector.broadcast %140 : vector<16x1xf32> to vector<16x128xf32>
    %142 = arith.mulf %137, %141 : vector<16x128xf32>
    %c0_54 = arith.constant 0 : index
    %c0_55 = arith.constant 0 : index
    %143 = vector.load %arg16[%c0_54, %c0_55] : memref<1x128xf32, #tpu.memory_space<vmem>>, vector<1x128xf32>
    %144 = vector.broadcast %143 : vector<1x128xf32> to vector<16x128xf32>
    %145 = arith.mulf %142, %144 : vector<16x128xf32>
    %c0_56 = arith.constant 0 : index
    %c0_57 = arith.constant 0 : index
    %146 = vector.load %arg17[%c0_56, %c0_57] : memref<1x128xf32, #tpu.memory_space<vmem>>, vector<1x128xf32>
    %147 = vector.broadcast %146 : vector<1x128xf32> to vector<16x128xf32>
    %148 = arith.addf %145, %147 : vector<16x128xf32>
    %c0_58 = arith.constant 0 : index
    %c0_59 = arith.constant 0 : index
    %149 = vector.load %arg18[%c0_58, %c0_59] : memref<16x128xf32, #tpu.memory_space<vmem>>, vector<16x128xf32>
    tpu.vector_store %arg18[%c0_58, %c0_59], %148 {strides = array<i32>} : memref<16x128xf32, #tpu.memory_space<vmem>>, vector<16x128xf32>,
    return
  }
  func.func @transform_0(%arg0: i32, %arg1: i32) -> (i32, i32) {
    %c0_i32 = arith.constant 0 : i32
    return %arg1, %arg0 : i32, i32
  }
  func.func @transform_1(%arg0: i32, %arg1: i32) -> (i32, i32) {
    %c0_i32 = arith.constant 0 : i32
    %c0_i32_0 = arith.constant 0 : i32
    return %c0_i32, %arg0 : i32, i32
  }
  func.func @transform_2(%arg0: i32, %arg1: i32) -> (i32, i32) {
    %c0_i32 = arith.constant 0 : i32
    %c0_i32_0 = arith.constant 0 : i32
    %c0_i32_1 = arith.constant 0 : i32
    return %c0_i32, %c0_i32_0 : i32, i32
  }
  func.func @transform_3(%arg0: i32, %arg1: i32) -> (i32, i32) {
    %c0_i32 = arith.constant 0 : i32
    %c0_i32_0 = arith.constant 0 : i32
    %c0_i32_1 = arith.constant 0 : i32
    return %c0_i32, %c0_i32_0 : i32, i32
  }
  func.func @transform_4(%arg0: i32, %arg1: i32) -> (i32, i32) {
    %c0_i32 = arith.constant 0 : i32
    %c0_i32_0 = arith.constant 0 : i32
    %c0_i32_1 = arith.constant 0 : i32
    return %c0_i32, %c0_i32_0 : i32, i32
  }
  func.func @transform_5(%arg0: i32, %arg1: i32) -> (i32, i32) {
    %c0_i32 = arith.constant 0 : i32
    %c0_i32_0 = arith.constant 0 : i32
    %c0_i32_1 = arith.constant 0 : i32
    return %c0_i32, %c0_i32_0 : i32, i32
  }
  func.func @transform_6(%arg0: i32, %arg1: i32) -> (i32, i32) {
    %c0_i32 = arith.constant 0 : i32
    %c0_i32_0 = arith.constant 0 : i32
    %c0_i32_1 = arith.constant 0 : i32
    return %c0_i32, %c0_i32_0 : i32, i32
  }
  func.func @transform_7(%arg0: i32, %arg1: i32) -> (i32, i32) {
    %c0_i32 = arith.constant 0 : i32
    %c0_i32_0 = arith.constant 0 : i32
    %c0_i32_1 = arith.constant 0 : i32
    return %c0_i32, %c0_i32_0 : i32, i32
  }
  func.func @transform_8(%arg0: i32, %arg1: i32) -> (i32, i32) {
    %c0_i32 = arith.constant 0 : i32
    %c0_i32_0 = arith.constant 0 : i32
    %c0_i32_1 = arith.constant 0 : i32
    return %c0_i32, %c0_i32_0 : i32, i32
  }
  func.func @transform_9(%arg0: i32, %arg1: i32) -> (i32, i32) {
    %c0_i32 = arith.constant 0 : i32
    %c0_i32_0 = arith.constant 0 : i32
    %c0_i32_1 = arith.constant 0 : i32
    return %c0_i32, %c0_i32_0 : i32, i32
  }
  func.func @transform_10(%arg0: i32, %arg1: i32) -> (i32, i32) {
    %c0_i32 = arith.constant 0 : i32
    %c0_i32_0 = arith.constant 0 : i32
    %c0_i32_1 = arith.constant 0 : i32
    return %c0_i32, %c0_i32_0 : i32, i32
  }
  func.func @transform_11(%arg0: i32, %arg1: i32) -> (i32, i32) {
    %c0_i32 = arith.constant 0 : i32
    %c0_i32_0 = arith.constant 0 : i32
    %c0_i32_1 = arith.constant 0 : i32
    return %c0_i32, %c0_i32_0 : i32, i32
  }
  func.func @transform_12(%arg0: i32, %arg1: i32) -> (i32, i32) {
    %c0_i32 = arith.constant 0 : i32
    %c0_i32_0 = arith.constant 0 : i32
    %c0_i32_1 = arith.constant 0 : i32
    return %c0_i32, %c0_i32_0 : i32, i32
  }
  func.func @transform_13(%arg0: i32, %arg1: i32) -> (i32, i32) {
    %c0_i32 = arith.constant 0 : i32
    %c0_i32_0 = arith.constant 0 : i32
    %c0_i32_1 = arith.constant 0 : i32
    return %c0_i32, %c0_i32_0 : i32, i32
  }
  func.func @transform_14(%arg0: i32, %arg1: i32) -> (i32, i32) {
    %c0_i32 = arith.constant 0 : i32
    %c0_i32_0 = arith.constant 0 : i32
    %c0_i32_1 = arith.constant 0 : i32
    return %c0_i32, %c0_i32_0 : i32, i32
  }
  func.func @transform_15(%arg0: i32, %arg1: i32) -> (i32, i32) {
    %c0_i32 = arith.constant 0 : i32
    %c0_i32_0 = arith.constant 0 : i32
    %c0_i32_1 = arith.constant 0 : i32
    return %c0_i32, %c0_i32_0 : i32, i32
  }
  func.func @transform_16(%arg0: i32, %arg1: i32) -> (i32, i32) {
    %c0_i32 = arith.constant 0 : i32
    return %arg1, %arg0 : i32, i32
  }
}

</mosaic_0001>

<bundles_post_ra>
// kernel: guided_attention_block.1
= control target key start
LH: loop header
LB: loop body
LE: loop exit
PB: predicated region body
PF: predicated region fallthrough
CT: control target
= control target key end

     0   :  { %s4422_s0 = inlined_call_operand.hbm [shape: f32[16,256], index: 0, kind: input, shape index: {}]   ;;  %s4423_s1 = inlined_call_operand.hbm [shape: f32[8,256], index: 1, kind: input, shape index: {}]   ;;  %s4424_s2 = inlined_call_operand.hbm [shape: bf16[128,128], index: 2, kind: input, shape index: {}]   ;;  %s4425_s3 = inlined_call_operand.hbm [shape: f32[1,128], index: 3, kind: input, shape index: {}]   ;;  %s4426_s4 = inlined_call_operand.hbm [shape: bf16[128,256], index: 4, kind: input, shape index: {}]   ;;  %s4427_s5 = inlined_call_operand.hbm [shape: f32[1,256], index: 5, kind: input, shape index: {}]   ;;  %s4428_s6 = inlined_call_operand.hbm [shape: bf16[128,128], index: 6, kind: input, shape index: {}]   ;;  %s4429_s7 = inlined_call_operand.hbm [shape: f32[1,128], index: 7, kind: input, shape index: {}]   ;;  %s4430_s8 = inlined_call_operand.hbm [shape: bf16[128,256], index: 8, kind: input, shape index: {}]   ;;  %s4431_s9 = inlined_call_operand.hbm [shape: f32[1,256], index: 9, kind: input, shape index: {}]   ;;  %s4432_s10 = inlined_call_operand.hbm [shape: bf16[256,128], index: 10, kind: input, shape index: {}]   ;;  %s4433_s11 = inlined_call_operand.hbm [shape: f32[1,128], index: 11, kind: input, shape index: {}]   ;;  %s4434_s12 = inlined_call_operand.hbm [shape: f32[1,128], index: 12, kind: input, shape index: {}]   ;;  %s4435_s13 = inlined_call_operand.hbm [shape: f32[1,128], index: 13, kind: input, shape index: {}]   ;;  %s4436_s14 = inlined_call_operand.hbm [shape: f32[1,128], index: 14, kind: input, shape index: {}]   ;;  %s4437_s15 = inlined_call_operand.hbm [shape: f32[1,128], index: 15, kind: input, shape index: {}]   ;;  %s4438_s16 = inlined_call_operand.hbm [shape: f32[16,256], index: 16, kind: output, shape index: {}]  }
   0x1   :  { %4461 = sst [smem:[#allocation48_spill]] %s4422_s0 }
   0x2   :  { %4462 = sst [smem:[#allocation49_spill]] %s4423_s1 }
   0x3   :  { %4463 = sst [smem:[#allocation50_spill]] %s4424_s2 }
   0x4   :  { %4464 = sst [smem:[#allocation51_spill]] %s4425_s3 }
   0x5   :  { %4465 = sst [smem:[#allocation52_spill]] %s4426_s4 }
   0x6   :  { %4466 = sst [smem:[#allocation53_spill]] %s4427_s5 }
   0x7   :  { %4467 = sst [smem:[#allocation54_spill]] %s4428_s6 }
   0x8   :  { %4468 = sst [smem:[#allocation55_spill]] %s4429_s7 }
   0x9   :  { %4469 = sst [smem:[#allocation56_spill]] %s4430_s8 }
   0xa   :  { %4470 = sst [smem:[#allocation57_spill]] %s4431_s9 }
   0xb   :  { %4471 = sst [smem:[#allocation58_spill]] %s4432_s10 }
   0xc   :  { %4472 = sst [smem:[#allocation59_spill]] %s4433_s11 }
   0xd   :  { %4473 = sst [smem:[#allocation60_spill]] %s4438_s16 }
   0xe   :  { %21 = vsyncpa [#allocation4], 0 }
   0xf   :  { %23 = vsyncpa [#allocation4 + $0x1], 0 }
  0x10   :  { %24 = vsyncpa [#allocation7], 0 }
  0x11   :  { %26 = vsyncpa [#allocation7 + $0x1], 0 }
  0x12   :  { %27 = vsyncpa [#allocation10], 0 }
  0x13   :  { %28 = vsyncpa [#allocation13], 0 }
  0x14   :  { %29 = vsyncpa [#allocation16], 0 }
  0x15   :  { %30 = vsyncpa [#allocation19], 0 }
  0x16   :  { %31 = vsyncpa [#allocation22], 0 }
  0x17   :  { %32 = vsyncpa [#allocation25], 0 }
  0x18   :  { %33 = vsyncpa [#allocation28], 0 }
  0x19   :  { %34 = vsyncpa [#allocation5], 0 }
  0x1a   :  { %36 = vsyncpa [#allocation5 + $0x1], 0  ;;  %s3700_s21 = smov 0   ;;  %s3702_s22 = smov 0  }
  0x1b   :  { %s3704_s23 = smov 0   ;;  %s3706_s24 = smov 0  }
  0x1c   :  { %s3708_s25 = smov 0   ;;  %s3710_s26 = smov 0  }
  0x1d LB: > { %4474 = sst [smem:[#allocation41_spill]] %s3562_s21  ;;  %s3731_s27 = sadd.s32 4294967295, %s3582_s26   ;;  %s3582_s26 = sphi %s3710_s26, %s42_s26   ;;  %s3578_s25 = sphi %s3708_s25, %s4544_s25   ;;  %s3574_s24 = sphi %s3706_s24, %s4542_s24   ;;  %s3570_s23 = sphi %s3704_s23, %s4543_s23   ;;  %s3566_s22 = sphi %s3702_s22, %s4541_s22   ;;  %s3562_s21 = sphi %s3700_s21, %s4540_s21  }
  0x1e   : > { %4475 = sst [smem:[#allocation42_spill]] %s3566_s22  ;;  %p2384_p0 = scmp.ge.s32.totalorder %s3582_s26, 1 }
  0x1f   : > { %4476 = sst [smem:[#allocation43_spill]] %s3570_s23  ;;  %p4449_p1 = scmp.eq.s32.totalorder %s3731_s27, 0 }
  0x20   : > { %4477 = sst [smem:[#allocation44_spill]] %s3574_s24  ;;  %p435_p2 = scmp.lt.s32.totalorder %s3582_s26, 3 }
  0x21   : > { %4478 = sst [smem:[#allocation45_spill]] %s3578_s25  ;;  %s3584_s29 = smov [#allocation8]  }
  0x22   : > { %4479 = sst [smem:[#allocation46_spill]] %s3731_s27  ;;  %p3736_p3 = pnand %p2384_p0, %p435_p2 }
  0x23   : > { %s447_s30 = sshll.u32 %s3584_s29, 4  ;;  %s3585_s17 = smov [#allocation9]   ;;  %s3740_s30 = int_to_ptr.vmem [resolvable:$true] %s447_s30 }
  0x24   : > { %s4480_s28 = scalar_select %p3736_p3, 1, 0 }
  0x25   : > { %p2717_p4 = pneg %p3736_p3  ;;  %s461_s18 = sshll.u32 %s3585_s17, 4  ;;  %s3751_s18 = int_to_ptr.vmem [resolvable:$true] %s461_s18 }
  0x26   : > { %4481 = sst [smem:[#allocation47_spill]] %s4480_s28  ;;  %s3586_s19 = smov [#allocation12]  }
  0x27   : > { %p3747_p6 = pnand %p2717_p4, %p4449_p1  ;;  %s3753_s20 = sshll.u32 %s3586_s19, 4  ;;  %s486_s20 = int_to_ptr.vmem [resolvable:$true] %s3753_s20 }
  0x28   : > { %s4483_s2 = sld [smem:[#allocation50_spill]] }
  0x29   : > { %p3763_p8 = pneg %p3747_p6 }
  0x2e   : > { %s3012_s24 = scalar_lea.hbm %s4483_s2, 1024 }
  0x2f   : > { %p3013_p7 = scmp.ne.s32.totalorder %s4483_s2, %s3012_s24  ;;  %p3019_p11 = scmp.lt.u32.totalorder %s3012_s24, %s4483_s2 }
  0x31   : > { %p3015_p9 = pnand %p3763_p8, %p3013_p7 }
  0x33   : > { %p3016_p10 = pneg %p3015_p9 }
  0x35   : > { %p3021_p12 = pnand %p3019_p11, %p3016_p10 }
  0x37   : > { %3024 = shalt.err (!%p3021_p12)
}
  0x38   : > { %s3025_s1 = scalar_lea.vmem %s3740_s30, 1024  ;;  %p3033_p4 = scmp.lt.s32.totalorder %s3740_s30, %s3740_s30 }
  0x39   : > { %p3026_p13 = scmp.ne.s32.totalorder %s3740_s30, %s3025_s1  ;;  %p3034_p5 = scmp.lt.s32.totalorder %s3025_s1, %s3025_s1 }
  0x3b   : > { %p3028_p0 = pnand %p3026_p13, %p3763_p8  ;;  %p3035_p7 = por %p3034_p5, %p3033_p4 }
  0x3d   : > { %p3029_p2 = pneg %p3028_p0 }
  0x3f   : > { %p3036_p9 = pnand %p3035_p7, %p3029_p2 }
  0x41   : > { %3039 = shalt.err (!%p3036_p9)
}
  0x42   : > { %s4451_s16 = smov 64   ;;  %s4453_s24 = smov 4  }
  0x43   : > { %2720 = dma.hbm_to_vmem [thread:$0]  (!%p3747_p6), %s4483_s2, 1024, %s3740_s30, [#allocation7], %s4451_s16, %s4451_s16, %s4453_s24  }
  0x44   : > { %s4485_s3 = sld [smem:[#allocation51_spill]] }
  0x4a   : > { %s3040_s1 = scalar_lea.hbm %s4485_s3, 16 }
  0x4b   : > { %p3041_p5 = scmp.ne.s32.totalorder %s4485_s3, %s3040_s1  ;;  %p3047_p12 = scmp.lt.u32.totalorder %s3040_s1, %s4485_s3 }
  0x4d   : > { %p3043_p10 = pnand %p3041_p5, %p3763_p8 }
  0x4f   : > { %p3044_p11 = pneg %p3043_p10 }
  0x51   : > { %p3049_p13 = pnand %p3047_p12, %p3044_p11 }
  0x53   : > { %3052 = shalt.err (!%p3049_p13)
}
  0x54   : > { %s3053_s30 = scalar_lea.vmem %s3751_s18, 16  ;;  %s3060_s21 = scalar_lea.vmem %s3751_s18, 32 }
  0x55   : > { %p3054_p0 = scmp.ne.s32.totalorder %s3751_s18, %s3053_s30  ;;  %p3061_p7 = scmp.lt.s32.totalorder %s3751_s18, %s3751_s18 }
  0x56   : > { %p3062_p9 = scmp.lt.s32.totalorder %s3060_s21, %s3053_s30 }
  0x57   : > { %p3056_p2 = pnand %p3054_p0, %p3763_p8 }
  0x58   : > { %p3063_p5 = por %p3062_p9, %p3061_p7 }
  0x59   : > { %p3057_p4 = pneg %p3056_p2 }
  0x5b   : > { %p3064_p10 = pnand %p3063_p5, %p3057_p4 }
  0x5d   : > { %3067 = shalt.err (!%p3064_p10)
}
  0x5e   : > { %2723 = dma.hbm_to_vmem [thread:$0]  (!%p3747_p6), %s4485_s3, 16, %s3751_s18, [#allocation10]  }
  0x5f   : > { %s4486_s5 = sld [smem:[#allocation53_spill]] }
  0x65   : > { %s3068_s29 = scalar_lea.hbm %s4486_s5, 32 }
  0x66   : > { %p3069_p11 = scmp.ne.s32.totalorder %s4486_s5, %s3068_s29  ;;  %p3075_p0 = scmp.lt.u32.totalorder %s3068_s29, %s4486_s5 }
  0x68   : > { %p3071_p12 = pnand %p3069_p11, %p3763_p8 }
  0x6a   : > { %p3072_p13 = pneg %p3071_p12 }
  0x6c   : > { %p3077_p2 = pnand %p3075_p0, %p3072_p13 }
  0x6e   : > { %3080 = shalt.err (!%p3077_p2)
}
  0x6f   : > { %s3081_s21 = scalar_lea.vmem %s486_s20, 32  ;;  %p3089_p5 = scmp.lt.s32.totalorder %s486_s20, %s486_s20 }
  0x70   : > { %p3082_p4 = scmp.ne.s32.totalorder %s486_s20, %s3081_s21  ;;  %p3090_p10 = scmp.lt.s32.totalorder %s3081_s21, %s3081_s21 }
  0x72   : > { %p3084_p7 = pnand %p3082_p4, %p3763_p8  ;;  %p3091_p1 = por %p3090_p10, %p3089_p5 }
  0x74   : > { %p3085_p9 = pneg %p3084_p7 }
  0x76   : > { %p3092_p3 = pnand %p3091_p1, %p3085_p9 }
  0x78   : > { %3095 = shalt.err (!%p3092_p3)
}
  0x79   : > { %2729 = dma.hbm_to_vmem [thread:$0]  (!%p3747_p6), %s4486_s5, 32, %s486_s20, [#allocation13]  }
  0x7a   : > { %s3589_s23 = smov [#allocation15]   ;;  %s3590_s28 = smov [#allocation18]  }
  0x7b   : > { %s509_s25 = sshll.u32 %s3589_s23, 4  ;;  %s533_s29 = sshll.u32 %s3590_s28, 4  ;;  %s510_s25 = int_to_ptr.vmem [resolvable:$true] %s509_s25  ;;  %s534_s29 = int_to_ptr.vmem [resolvable:$true] %s533_s29 }
  0x7c   : > { %s4487_s7 = sld [smem:[#allocation55_spill]] }
  0x82   : > { %s3096_s1 = scalar_lea.hbm %s4487_s7, 16 }
  0x83   : > { %p3097_p1 = scmp.ne.s32.totalorder %s4487_s7, %s3096_s1  ;;  %p3103_p12 = scmp.lt.u32.totalorder %s3096_s1, %s4487_s7 }
  0x85   : > { %p3099_p3 = pnand %p3097_p1, %p3763_p8 }
  0x87   : > { %p3100_p11 = pneg %p3099_p3 }
  0x89   : > { %p3105_p13 = pnand %p3103_p12, %p3100_p11 }
  0x8b   : > { %3108 = shalt.err (!%p3105_p13)
}
  0x8c   : > { %s3109_s20 = scalar_lea.vmem %s510_s25, 16  ;;  %s3116_s22 = scalar_lea.vmem %s510_s25, 32 }
  0x8d   : > { %p3110_p0 = scmp.ne.s32.totalorder %s510_s25, %s3109_s20  ;;  %p3117_p7 = scmp.lt.s32.totalorder %s510_s25, %s510_s25 }
  0x8e   : > { %p3118_p9 = scmp.lt.s32.totalorder %s3116_s22, %s3109_s20 }
  0x8f   : > { %p3112_p2 = pnand %p3110_p0, %p3763_p8 }
  0x90   : > { %p3119_p5 = por %p3118_p9, %p3117_p7 }
  0x91   : > { %p3113_p4 = pneg %p3112_p2 }
  0x93   : > { %p3120_p10 = pnand %p3119_p5, %p3113_p4 }
  0x95   : > { %3123 = shalt.err (!%p3120_p10)
}
  0x96   : > { %2735 = dma.hbm_to_vmem [thread:$0]  (!%p3747_p6), %s4487_s7, 16, %s510_s25, [#allocation16]  }
  0x97   : > { %s4488_s9 = sld [smem:[#allocation57_spill]] }
  0x9d   : > { %s3124_s19 = scalar_lea.hbm %s4488_s9, 32 }
  0x9e   : > { %p3125_p1 = scmp.ne.s32.totalorder %s4488_s9, %s3124_s19  ;;  %p3131_p12 = scmp.lt.u32.totalorder %s3124_s19, %s4488_s9 }
  0xa0   : > { %p3127_p3 = pnand %p3125_p1, %p3763_p8 }
  0xa2   : > { %p3128_p11 = pneg %p3127_p3 }
  0xa4   : > { %p3133_p13 = pnand %p3131_p12, %p3128_p11 }
  0xa6   : > { %3136 = shalt.err (!%p3133_p13)
}
  0xa7   : > { %s3137_s20 = scalar_lea.vmem %s534_s29, 32  ;;  %p3145_p7 = scmp.lt.s32.totalorder %s534_s29, %s534_s29 }
  0xa8   : > { %p3138_p0 = scmp.ne.s32.totalorder %s534_s29, %s3137_s20  ;;  %p3146_p9 = scmp.lt.s32.totalorder %s3137_s20, %s3137_s20 }
  0xaa   : > { %p3140_p2 = pnand %p3138_p0, %p3763_p8  ;;  %p3147_p5 = por %p3146_p9, %p3145_p7 }
  0xac   : > { %p3141_p4 = pneg %p3140_p2 }
  0xae   : > { %p3148_p10 = pnand %p3147_p5, %p3141_p4 }
  0xb0   : > { %3151 = shalt.err (!%p3148_p10)
}
  0xb1   : > { %2741 = dma.hbm_to_vmem [thread:$0]  (!%p3747_p6), %s4488_s9, 32, %s534_s29, [#allocation19]  }
  0xb2   : > { %s3591_s23 = smov [#allocation21]   ;;  %s3592_s16 = smov [#allocation24]  }
  0xb3   : > { %s557_s28 = sshll.u32 %s3591_s23, 4  ;;  %s579_s17 = sshll.u32 %s3592_s16, 4  ;;  %s558_s28 = int_to_ptr.vmem [resolvable:$true] %s557_s28  ;;  %s580_s17 = int_to_ptr.vmem [resolvable:$true] %s579_s17 }
  0xb4   : > { %s4489_s11 = sld [smem:[#allocation59_spill]] }
  0xba   : > { %s3152_s30 = scalar_lea.hbm %s4489_s11, 16 }
  0xbb   : > { %p3153_p1 = scmp.ne.s32.totalorder %s4489_s11, %s3152_s30  ;;  %p3159_p12 = scmp.lt.u32.totalorder %s3152_s30, %s4489_s11 }
  0xbd   : > { %p3155_p3 = pnand %p3153_p1, %p3763_p8 }
  0xbf   : > { %p3156_p11 = pneg %p3155_p3 }
  0xc1   : > { %p3161_p13 = pnand %p3159_p12, %p3156_p11 }
  0xc3   : > { %3164 = shalt.err (!%p3161_p13)
}
  0xc4   : > { %s3165_s29 = scalar_lea.vmem %s558_s28, 16  ;;  %s3172_s22 = scalar_lea.vmem %s558_s28, 32 }
  0xc5   : > { %p3166_p0 = scmp.ne.s32.totalorder %s558_s28, %s3165_s29  ;;  %p3173_p7 = scmp.lt.s32.totalorder %s558_s28, %s558_s28 }
  0xc6   : > { %p3174_p9 = scmp.lt.s32.totalorder %s3172_s22, %s3165_s29 }
  0xc7   : > { %p3168_p2 = pnand %p3166_p0, %p3763_p8 }
  0xc8   : > { %p3175_p5 = por %p3174_p9, %p3173_p7 }
  0xc9   : > { %p3169_p4 = pneg %p3168_p2 }
  0xcb   : > { %p3176_p10 = pnand %p3175_p5, %p3169_p4 }
  0xcd   : > { %3179 = shalt.err (!%p3176_p10)
}
  0xce   : > { %2747 = dma.hbm_to_vmem [thread:$0]  (!%p3747_p6), %s4489_s11, 16, %s558_s28, [#allocation22]  }
  0xcf   : > { %s3180_s30 = scalar_lea.hbm %s4435_s13, 16 }
  0xd0   : > { %p3181_p1 = scmp.ne.s32.totalorder %s4435_s13, %s3180_s30  ;;  %p3187_p12 = scmp.lt.u32.totalorder %s3180_s30, %s4435_s13 }
  0xd2   : > { %p3183_p3 = pnand %p3181_p1, %p3763_p8 }
  0xd4   : > { %p3184_p11 = pneg %p3183_p3 }
  0xd6   : > { %p3189_p13 = pnand %p3187_p12, %p3184_p11 }
  0xd8   : > { %3192 = shalt.err (!%p3189_p13)
}
  0xd9   : > { %s3193_s29 = scalar_lea.vmem %s580_s17, 16  ;;  %s3200_s28 = scalar_lea.vmem %s580_s17, 32 }
  0xda   : > { %p3194_p0 = scmp.ne.s32.totalorder %s580_s17, %s3193_s29  ;;  %p3201_p7 = scmp.lt.s32.totalorder %s580_s17, %s580_s17 }
  0xdb   : > { %p3202_p9 = scmp.lt.s32.totalorder %s3200_s28, %s3193_s29 }
  0xdc   : > { %p3196_p2 = pnand %p3194_p0, %p3763_p8 }
  0xdd   : > { %p3203_p5 = por %p3202_p9, %p3201_p7 }
  0xde   : > { %p3197_p4 = pneg %p3196_p2 }
  0xe0   : > { %p3204_p10 = pnand %p3203_p5, %p3197_p4 }
  0xe2   : > { %3207 = shalt.err (!%p3204_p10)
}
  0xe3   : > { %2753 = dma.hbm_to_vmem [thread:$0]  (!%p3747_p6), %s4435_s13, 16, %s580_s17, [#allocation25]  }
  0xe4   : > { %s3593_s16 = smov [#allocation11]   ;;  %s4490_s4 = sld [smem:[#allocation52_spill]] }
  0xe5   : > { %s471_s19 = sshll.u32 %s3593_s16, 4  ;;  %s472_s19 = int_to_ptr.vmem [resolvable:$true] %s471_s19 }
  0xea   : > { %s3208_s21 = scalar_lea.hbm %s4490_s4, 2048 }
  0xeb   : > { %p3209_p1 = scmp.ne.s32.totalorder %s4490_s4, %s3208_s21  ;;  %p3215_p12 = scmp.lt.u32.totalorder %s3208_s21, %s4490_s4 }
  0xed   : > { %p3211_p3 = pnand %p3209_p1, %p3763_p8 }
  0xef   : > { %p3212_p11 = pneg %p3211_p3 }
  0xf1   : > { %p3217_p13 = pnand %p3215_p12, %p3212_p11 }
  0xf3   : > { %3220 = shalt.err (!%p3217_p13)
}
  0xf4   : > { %s3221_s17 = scalar_lea.vmem %s472_s19, 2048  ;;  %p3229_p7 = scmp.lt.s32.totalorder %s472_s19, %s472_s19 }
  0xf5   : > { %p3222_p0 = scmp.ne.s32.totalorder %s472_s19, %s3221_s17  ;;  %p3230_p9 = scmp.lt.s32.totalorder %s3221_s17, %s3221_s17 }
  0xf7   : > { %p3224_p2 = pnand %p3222_p0, %p3763_p8  ;;  %p3231_p5 = por %p3230_p9, %p3229_p7 }
  0xf9   : > { %p3225_p4 = pneg %p3224_p2 }
  0xfb   : > { %p3232_p10 = pnand %p3231_p5, %p3225_p4 }
  0xfd   : > { %3235 = shalt.err (!%p3232_p10)
}
  0xfe   : > { %s4455_s28 = smov 128   ;;  %s4457_s22 = smov 8  }
  0xff   : > { %2726 = dma.hbm_to_vmem [thread:$0]  (!%p3747_p6), %s4490_s4, 2048, %s472_s19, [#allocation10], %s4455_s28, %s4455_s28, %s4457_s22  }
 0x100   : > { %s3596_s1 = smov [#allocation14]   ;;  %s3597_s21 = smov [#allocation17]  }
 0x101   : > { %s495_s30 = sshll.u32 %s3596_s1, 4  ;;  %s519_s18 = sshll.u32 %s3597_s21, 4  ;;  %s496_s30 = int_to_ptr.vmem [resolvable:$true] %s495_s30  ;;  %s3923_s18 = int_to_ptr.vmem [resolvable:$true] %s519_s18 }
 0x102   : > { %s4491_s6 = sld [smem:[#allocation54_spill]] }
 0x108   : > { %s3236_s29 = scalar_lea.hbm %s4491_s6, 1024 }
 0x109   : > { %p3237_p1 = scmp.ne.s32.totalorder %s4491_s6, %s3236_s29  ;;  %p3243_p12 = scmp.lt.u32.totalorder %s3236_s29, %s4491_s6 }
 0x10b   : > { %p3239_p3 = pnand %p3237_p1, %p3763_p8 }
 0x10d   : > { %p3240_p11 = pneg %p3239_p3 }
 0x10f   : > { %p3245_p13 = pnand %p3243_p12, %p3240_p11 }
 0x111   : > { %3248 = shalt.err (!%p3245_p13)
}
 0x112   : > { %s3249_s16 = scalar_lea.vmem %s496_s30, 1024  ;;  %p3257_p7 = scmp.lt.s32.totalorder %s496_s30, %s496_s30 }
 0x113   : > { %p3250_p0 = scmp.ne.s32.totalorder %s496_s30, %s3249_s16  ;;  %p3258_p9 = scmp.lt.s32.totalorder %s3249_s16, %s3249_s16 }
 0x115   : > { %p3252_p2 = pnand %p3250_p0, %p3763_p8  ;;  %p3259_p5 = por %p3258_p9, %p3257_p7 }
 0x117   : > { %p3253_p4 = pneg %p3252_p2 }
 0x119   : > { %p3260_p10 = pnand %p3259_p5, %p3253_p4 }
 0x11b   : > { %3263 = shalt.err (!%p3260_p10)
}
 0x11c   : > { %s4492_s24 = smov 4   ;;  %s4493_s1 = smov 64  }
 0x11d   : > { %2732 = dma.hbm_to_vmem [thread:$0]  (!%p3747_p6), %s4491_s6, 1024, %s496_s30, [#allocation13], %s4493_s1, %s4493_s1, %s4492_s24  }
 0x11e   : > { %s4494_s8 = sld [smem:[#allocation56_spill]] }
 0x124   : > { %s3264_s17 = scalar_lea.hbm %s4494_s8, 2048 }
 0x125   : > { %p3265_p1 = scmp.ne.s32.totalorder %s4494_s8, %s3264_s17  ;;  %p3271_p12 = scmp.lt.u32.totalorder %s3264_s17, %s4494_s8 }
 0x127   : > { %p3267_p3 = pnand %p3265_p1, %p3763_p8 }
 0x129   : > { %p3268_p11 = pneg %p3267_p3 }
 0x12b   : > { %p3273_p13 = pnand %p3271_p12, %p3268_p11 }
 0x12d   : > { %3276 = shalt.err (!%p3273_p13)
}
 0x12e   : > { %s3277_s30 = scalar_lea.vmem %s3923_s18, 2048  ;;  %p3285_p7 = scmp.lt.s32.totalorder %s3923_s18, %s3923_s18 }
 0x12f   : > { %p3278_p0 = scmp.ne.s32.totalorder %s3923_s18, %s3277_s30  ;;  %p3286_p9 = scmp.lt.s32.totalorder %s3277_s30, %s3277_s30 }
 0x131   : > { %p3280_p2 = pnand %p3278_p0, %p3763_p8  ;;  %p3287_p5 = por %p3286_p9, %p3285_p7 }
 0x133   : > { %p3281_p4 = pneg %p3280_p2 }
 0x135   : > { %p3288_p10 = pnand %p3287_p5, %p3281_p4 }
 0x137   : > { %3291 = shalt.err (!%p3288_p10)
}
 0x138   : > { %s4495_s28 = smov 128   ;;  %s3598_s25 = smov [#allocation20]  }
 0x139   : > { %2738 = dma.hbm_to_vmem [thread:$0]  (!%p3747_p6), %s4494_s8, 2048, %s3923_s18, [#allocation16], %s4495_s28, %s4495_s28, %s4457_s22  }
 0x13a   : > { %s543_s29 = sshll.u32 %s3598_s25, 4  ;;  %s3599_s17 = smov [#allocation23]   ;;  %s544_s29 = int_to_ptr.vmem [resolvable:$true] %s543_s29 }
 0x13b   : > { %s568_s23 = sshll.u32 %s3599_s17, 4  ;;  %s4496_s10 = sld [smem:[#allocation58_spill]]  ;;  %s3972_s23 = int_to_ptr.vmem [resolvable:$true] %s568_s23 }
 0x141   : > { %s3292_s30 = scalar_lea.hbm %s4496_s10, 2048 }
 0x142   : > { %p3293_p1 = scmp.ne.s32.totalorder %s4496_s10, %s3292_s30  ;;  %p3299_p12 = scmp.lt.u32.totalorder %s3292_s30, %s4496_s10 }
 0x144   : > { %p3295_p3 = pnand %p3293_p1, %p3763_p8 }
 0x146   : > { %p3296_p11 = pneg %p3295_p3 }
 0x148   : > { %p3301_p13 = pnand %p3299_p12, %p3296_p11 }
 0x14a   : > { %3304 = shalt.err (!%p3301_p13)
}
 0x14b   : > { %s3305_s20 = scalar_lea.vmem %s544_s29, 2048  ;;  %p3313_p7 = scmp.lt.s32.totalorder %s544_s29, %s544_s29 }
 0x14c   : > { %p3306_p0 = scmp.ne.s32.totalorder %s544_s29, %s3305_s20  ;;  %p3314_p9 = scmp.lt.s32.totalorder %s3305_s20, %s3305_s20 }
 0x14e   : > { %p3308_p2 = pnand %p3306_p0, %p3763_p8  ;;  %p3315_p5 = por %p3314_p9, %p3313_p7 }
 0x150   : > { %p3309_p4 = pneg %p3308_p2 }
 0x152   : > { %p3316_p10 = pnand %p3315_p5, %p3309_p4 }
 0x154   : > { %3319 = shalt.err (!%p3316_p10)
}
 0x155   : > { %2744 = dma.hbm_to_vmem [thread:$0]  (!%p3747_p6), %s4496_s10, 2048, %s544_s29, [#allocation19], %s4493_s1, %s4493_s1, %s4492_s24  }
 0x156   : > { %s3320_s19 = scalar_lea.hbm %s4434_s12, 16 }
 0x157   : > { %p3321_p1 = scmp.ne.s32.totalorder %s4434_s12, %s3320_s19  ;;  %p3327_p12 = scmp.lt.u32.totalorder %s3320_s19, %s4434_s12 }
 0x159   : > { %p3323_p3 = pnand %p3321_p1, %p3763_p8 }
 0x15b   : > { %p3324_p11 = pneg %p3323_p3 }
 0x15d   : > { %p3329_p13 = pnand %p3327_p12, %p3324_p11 }
 0x15f   : > { %3332 = shalt.err (!%p3329_p13)
}
 0x160   : > { %s3333_s24 = scalar_lea.vmem %s3972_s23, 16  ;;  %s3340_s1 = scalar_lea.vmem %s3972_s23, 32 }
 0x161   : > { %p3334_p0 = scmp.ne.s32.totalorder %s3972_s23, %s3333_s24  ;;  %p3341_p7 = scmp.lt.s32.totalorder %s3972_s23, %s3972_s23 }
 0x162   : > { %p3342_p9 = scmp.lt.s32.totalorder %s3340_s1, %s3333_s24 }
 0x163   : > { %p3336_p2 = pnand %p3334_p0, %p3763_p8 }
 0x164   : > { %p3343_p5 = por %p3342_p9, %p3341_p7 }
 0x165   : > { %p3337_p4 = pneg %p3336_p2 }
 0x167   : > { %p3344_p10 = pnand %p3343_p5, %p3337_p4 }
 0x169   : > { %3347 = shalt.err (!%p3344_p10)
}
 0x16a   : > { %2750 = dma.hbm_to_vmem [thread:$0]  (!%p3747_p6), %s4434_s12, 16, %s3972_s23, [#allocation22]  }
 0x16b   : > { %s3600_s2 = smov [#allocation26]   ;;  %s3601_s25 = smov [#allocation27]  }
 0x16c   : > { %s590_s3 = sshll.u32 %s3600_s2, 4  ;;  %s601_s17 = sshll.u32 %s3601_s25, 4  ;;  %s591_s3 = int_to_ptr.vmem [resolvable:$true] %s590_s3  ;;  %s4019_s17 = int_to_ptr.vmem [resolvable:$true] %s601_s17 }
 0x16d   : > { %s3348_s30 = scalar_lea.hbm %s4436_s14, 16 }
 0x16e   : > { %p3349_p1 = scmp.ne.s32.totalorder %s4436_s14, %s3348_s30  ;;  %p3355_p12 = scmp.lt.u32.totalorder %s3348_s30, %s4436_s14 }
 0x170   : > { %p3351_p3 = pnand %p3349_p1, %p3763_p8 }
 0x172   : > { %p3352_p11 = pneg %p3351_p3 }
 0x174   : > { %p3357_p13 = pnand %p3355_p12, %p3352_p11 }
 0x176   : > { %3360 = shalt.err (!%p3357_p13)
}
 0x177   : > { %s3361_s1 = scalar_lea.vmem %s591_s3, 16  ;;  %s3368_s29 = scalar_lea.vmem %s591_s3, 32 }
 0x178   : > { %p3362_p0 = scmp.ne.s32.totalorder %s591_s3, %s3361_s1  ;;  %p3369_p7 = scmp.lt.s32.totalorder %s591_s3, %s591_s3 }
 0x179   : > { %p3370_p9 = scmp.lt.s32.totalorder %s3368_s29, %s3361_s1 }
 0x17a   : > { %p3364_p2 = pnand %p3362_p0, %p3763_p8 }
 0x17b   : > { %p3371_p5 = por %p3370_p9, %p3369_p7 }
 0x17c   : > { %p3365_p4 = pneg %p3364_p2 }
 0x17e   : > { %p3372_p10 = pnand %p3371_p5, %p3365_p4 }
 0x180   : > { %3375 = shalt.err (!%p3372_p10)
}
 0x181   : > { %2756 = dma.hbm_to_vmem [thread:$0]  (!%p3747_p6), %s4436_s14, 16, %s591_s3, [#allocation25]  }
 0x182   : > { %s3376_s16 = scalar_lea.hbm %s4437_s15, 16 }
 0x183   : > { %p3377_p1 = scmp.ne.s32.totalorder %s4437_s15, %s3376_s16  ;;  %p3383_p12 = scmp.lt.u32.totalorder %s3376_s16, %s4437_s15 }
 0x185   : > { %p3379_p3 = pnand %p3377_p1, %p3763_p8 }
 0x187   : > { %p3380_p11 = pneg %p3379_p3 }
 0x189   : > { %p3385_p13 = pnand %p3383_p12, %p3380_p11 }
 0x18b   : > { %3388 = shalt.err (!%p3385_p13)
}
 0x18c   : > { %s3389_s3 = scalar_lea.vmem %s4019_s17, 16  ;;  %s3396_s23 = scalar_lea.vmem %s4019_s17, 32 }
 0x18d   : > { %p3390_p0 = scmp.ne.s32.totalorder %s4019_s17, %s3389_s3  ;;  %p3397_p7 = scmp.lt.s32.totalorder %s4019_s17, %s4019_s17 }
 0x18e   : > { %p3398_p9 = scmp.lt.s32.totalorder %s3396_s23, %s3389_s3 }
 0x18f   : > { %p3392_p2 = pnand %p3390_p0, %p3763_p8 }
 0x190   : > { %p3399_p5 = por %p3398_p9, %p3397_p7 }
 0x191   : > { %p3393_p4 = pneg %p3392_p2 }
 0x193   : > { %p3400_p10 = pnand %p3399_p5, %p3393_p4 }
 0x195   : > { %3403 = shalt.err (!%p3400_p10)
}
 0x196   : > { %s4497_s20 = sld [smem:[#allocation45_spill]]  ;;  %s4498_s2 = sld [smem:[#allocation43_spill]] }
 0x197   : > { %s4499_s25 = sld [smem:[#allocation42_spill]]  ;;  %s4500_s27 = sld [smem:[#allocation41_spill]] }
 0x198   : > { %s4501_s19 = sld [smem:[#allocation46_spill]]  ;;  %s2383_s16 = sadd.s32 4294967294, %s3582_s26  }
 0x199   : > { %2759 = dma.hbm_to_vmem [thread:$0]  (!%p3747_p6), %s4437_s15, 16, %s4019_s17, [#allocation28]  }
 0x19a   : > { %p71_p3 = scmp.eq.s32.totalorder %s3582_s26, 0  ;;  %p428_p7 = scmp.eq.s32.totalorder %s2383_s16, 1 }
 0x19b   : > { %p2785_p5 = scmp.lt.s32.totalorder %s3582_s26, 2 }
 0x19c   : > { %s54_s30 = sadd.s32 1, %s4497_s20  ;;  %s63_s0 = sadd.s32 1, %s4498_s2 }
 0x19d   : > { %p56_p8 = scmp.ge.s32.totalorder %s54_s30, 2  ;;  %p70_p1 = scmp.ne.s32.totalorder %s4498_s2, %s4499_s25 }
 0x19e   : > { %p76_p12 = scmp.ne.s32.totalorder %s4499_s25, %s4500_s27  ;;  %p422_p6 = scmp.eq.s32.totalorder %s4501_s19, 1 }
 0x19f   : > { %s4546_s30 = smov (%p56_p8, %s54_s30), 0  ;;  %p4071_p11 = por %p71_p3, %p70_p1 }
 0x1a0   : > { %s59_s17 = ssub.s32 %s4497_s20, %s4546_s30  ;;  %p4503_p0 = scmp.eq.s32.totalorder %s4501_s19, 0 }
 0x1a1   : > { %p61_p13 = scmp.eq.s32.totalorder %s59_s17, 0  ;;  %p4086_p4 = por %p422_p6, %p70_p1 }
 0x1a2   : > { %p4082_p2 = por %p4503_p0, %p76_p12  ;;  %p4093_p9 = por %p428_p7, %p76_p12 }
 0x1a3   : > { %s4505_s24 = scalar_select %p4086_p4, 1, 0 }
 0x1a4   : > { %s4504_s18 = scalar_select %p4082_p2, 1, 0 }
 0x1a5   : > { %s4091_s3 = scalar_select %p61_p13, %s4498_s2, %s63_s0  }
 0x1a6   : > { %s4506_s23 = scalar_select %p4093_p9, 1, 0 }
 0x1a7   : > { %s4099_s1 = sand.u32 1, %s4498_s2   ;;  %s4458_s29 = sshll.u32 %s4497_s20, 7 }
 0x1a8   : > { %s2400_s25 = sshll.u32 %s4099_s1, 4  ;;  %s4507_s17 = sld [smem:[#allocation48_spill]] }
 0x1a9   : > { %s616_s16 = scalar_lea.vmem [#allocation3], %s2400_s25  ;;  %p4112_p10 = pnand %p2785_p5, %p4071_p11 }
 0x1aa   : > { %s625_s0 = sshll.u32 %s616_s16, 4  ;;  %s613_s5 = scalar_lea.sflag [#allocation4], %s4099_s1  ;;  %s4116_s0 = int_to_ptr.vmem [resolvable:$true] %s625_s0 }
 0x1ab   : > { %p3406_p1 = pneg %p4112_p10 }
 0x1ae   : > { %s4108_s22 = scalar_lea.hbm %s4507_s17, %s4458_s29  ;;  %s3409_s19 = scalar_lea.hbm %s4507_s17, 512 }
 0x1af   : > { %s3404_s27 = scalar_lea.hbm %s4108_s22, 256  ;;  %p3410_p11 = scmp.lt.u32.totalorder %s4108_s22, %s4507_s17 }
 0x1b0   : > { %p3405_p8 = scmp.ne.s32.totalorder %s4108_s22, %s3404_s27  ;;  %p3411_p6 = scmp.lt.u32.totalorder %s3409_s19, %s3404_s27 }
 0x1b1   : > { %p3413_p0 = scmp.lt.u32.totalorder %s3404_s27, %s4108_s22 }
 0x1b2   : > { %p3407_p3 = pnand %p3406_p1, %p3405_p8  ;;  %p3412_p13 = por %p3411_p6, %p3410_p11 }
 0x1b4   : > { %p3408_p12 = pneg %p3407_p3  ;;  %p3414_p7 = por %p3413_p0, %p3412_p13 }
 0x1b6   : > { %p3415_p5 = pnand %p3414_p7, %p3408_p12 }
 0x1b8   : > { %3418 = shalt.err (!%p3415_p5)
}
 0x1b9   : > { %s3419_s4 = scalar_lea.vmem %s4116_s0, 256  ;;  %s3602_s25 = smov [#allocation3]  }
 0x1ba   : > { %p3420_p8 = scmp.ne.s32.totalorder %s4116_s0, %s3419_s4  ;;  %s3424_s21 = sshll.u32 %s3602_s25, 4  ;;  %s3425_s21 = int_to_ptr.vmem [resolvable:$false] %s3424_s21 }
 0x1bb   : > { %s3426_s29 = scalar_lea.vmem %s3425_s21, 512  ;;  %p3427_p4 = scmp.lt.s32.totalorder %s4116_s0, %s3425_s21 }
 0x1bc   : > { %p3422_p3 = pnand %p3420_p8, %p3406_p1  ;;  %p3428_p11 = scmp.lt.s32.totalorder %s3426_s29, %s3419_s4 }
 0x1be   : > { %p3423_p9 = pneg %p3422_p3  ;;  %p3429_p6 = por %p3428_p11, %p3427_p4 }
 0x1c0   : > { %p3430_p13 = pnand %p3429_p6, %p3423_p9 }
 0x1c2   : > { %3433 = shalt.err (!%p3430_p13)
}
 0x1c3   : > { %s3603_s27 = smov 256   ;;  %s4509_s19 = smov 8  }
 0x1c4   : > { %2763 = dma.hbm_to_vmem [thread:$0]  (!%p4112_p10), %s4108_s22, 256, %s4116_s0, %s613_s5, %s3603_s27, %s4495_s28, %s4509_s19  }
 0x1c5   : > { %s2402_s16 = sshll.u32 %s4099_s1, 3  ;;  %s4510_s25 = sshll.u32 %s4497_s20, 7 }
 0x1c6   : > { %s4511_s29 = sld [smem:[#allocation49_spill]]  ;;  %s639_s7 = scalar_lea.vmem [#allocation6], %s2402_s16 }
 0x1c7   : > { %s646_s8 = sshll.u32 %s639_s7, 4  ;;  %s4512_s9 = sand.u32 1, %s3582_s26   ;;  %s647_s8 = int_to_ptr.vmem [resolvable:$true] %s646_s8 }
 0x1c8   : > { %s636_s10 = scalar_lea.sflag [#allocation7], %s4512_s9 }
 0x1cc   : > { %s4155_s6 = scalar_lea.hbm %s4511_s29, %s4510_s25  ;;  %s3439_s28 = scalar_lea.hbm %s4511_s29, 256 }
 0x1cd   : > { %s3434_s11 = scalar_lea.hbm %s4155_s6, 128  ;;  %p3440_p0 = scmp.lt.u32.totalorder %s4155_s6, %s4511_s29 }
 0x1ce   : > { %p3435_p4 = scmp.ne.s32.totalorder %s4155_s6, %s3434_s11  ;;  %p3441_p7 = scmp.lt.u32.totalorder %s3439_s28, %s3434_s11 }
 0x1cf   : > { %p3443_p8 = scmp.lt.u32.totalorder %s3434_s11, %s4155_s6 }
 0x1d0   : > { %p3437_p9 = pnand %p3435_p4, %p3406_p1  ;;  %p3442_p5 = por %p3441_p7, %p3440_p0 }
 0x1d2   : > { %p3438_p12 = pneg %p3437_p9  ;;  %p3444_p3 = por %p3443_p8, %p3442_p5 }
 0x1d4   : > { %p3445_p11 = pnand %p3444_p3, %p3438_p12 }
 0x1d6   : > { %3448 = shalt.err (!%p3445_p11)
}
 0x1d7   : > { %s3449_s7 = scalar_lea.vmem %s647_s8, 128  ;;  %s3604_s9 = smov [#allocation6]  }
 0x1d8   : > { %p3450_p6 = scmp.ne.s32.totalorder %s647_s8, %s3449_s7  ;;  %s3454_s0 = sshll.u32 %s3604_s9, 4  ;;  %s3455_s0 = int_to_ptr.vmem [resolvable:$false] %s3454_s0 }
 0x1d9   : > { %s3456_s27 = scalar_lea.vmem %s3455_s0, 256  ;;  %p3457_p9 = scmp.lt.s32.totalorder %s647_s8, %s3455_s0 }
 0x1da   : > { %p3452_p13 = pnand %p3450_p6, %p3406_p1  ;;  %p3458_p2 = scmp.lt.s32.totalorder %s3456_s27, %s3449_s7 }
 0x1dc   : > { %p3453_p4 = pneg %p3452_p13  ;;  %p3459_p0 = por %p3458_p2, %p3457_p9 }
 0x1de   : > { %p3460_p7 = pnand %p3459_p0, %p3453_p4 }
 0x1e0   : > { %3463 = shalt.err (!%p3460_p7)
}
 0x1e1   : > { %2766 = dma.hbm_to_vmem [thread:$0]  (!%p4112_p10), %s4155_s6, 128, %s647_s8, %s636_s10  }
 0x1e2   : > { %s4513_s11 = sld [smem:[#allocation47_spill]] }
 0x1e8   : > { %p4514_p12 = scmp.ne.s32.totalorder %s4513_s11, 0 }
 0x1e9   : > { %s4515_s19 = sld [smem:[#allocation42_spill]] (!%p4514_p12)  ;;  %p4516_p2 = scmp.ne.s32.totalorder (!%p4514_p12), %s4504_s18, 0 }
 0x1ea   : > { %655 = sbr.rel (%p4514_p12) target bundleno = 3532 (0xdcc), region = 84 }
 0x1ef   : > { %s4181_s16 = sand.u32 (!%p4514_p12), 1, %s4515_s19  }
 0x1f0   : > { %s2405_s25 = sshll.u32 (!%p4514_p12), %s4181_s16, 4  ;;  %s658_s4 = scalar_lea.sflag (!%p4514_p12), [#allocation4], %s4181_s16 }
 0x1f1   : > { %s4187_s21 = scalar_lea.vmem [#allocation3], %s2405_s25 }
 0x1f2   : > { %3517 = dma.done.wait (%p4516_p2), %s658_s4, 256  }
 0x1f3   : > { %3519 = vsyncadd (%p4516_p2), %s658_s4, 4294967040  ;;  %s4517_s6 = sld [smem:[#allocation46_spill]]  ;;  %s2406_s10 = sshll.u32 %s4181_s16, 3 }
 0x1f4   : > { %s4195_s5 = scalar_lea.vmem [#allocation6], %s2406_s10 }
 0x1f9   : > { %s666_s8 = sand.u32 1, %s4517_s6  }
 0x1fa   : > { %s667_s2 = scalar_lea.sflag [#allocation7], %s666_s8 }
 0x1fb   : > { %3521 = dma.done.wait (%p4516_p2), %s667_s2, 128  }
 0x1fc   : > { %3523 = vsyncadd (%p4516_p2), %s667_s2, 4294967168  ;;  %p4518_p10 = scmp.eq.s32.totalorder %s4517_s6, 0 }
 0x1fe   : > { %3525 = dma.done.wait (%p4518_p10), [#allocation7], 1024   ;;  %p4519_p1 = pmov %p4518_p10 }
 0x200   : > { %3527 = vsyncadd (%p4519_p1), [#allocation7], 4294966272  ;;  %p4520_p5 = pmov %p4519_p1 }
 0x201   : > { %p4521_p8 = pmov %p4519_p1 }
 0x202   : > { %3529 = dma.done.wait (%p4520_p5), [#allocation10], 2064  }
 0x203   : > { %3531 = vsyncadd (%p4521_p8), [#allocation10], 4294965232  ;;  %p4522_p3 = pmov %p4519_p1 }
 0x204   : > { %p4523_p11 = pmov %p4519_p1 }
 0x205   : > { %3533 = dma.done.wait (%p4522_p3), [#allocation13], 1056  }
 0x206   : > { %3535 = vsyncadd (%p4523_p11), [#allocation13], 4294966240  ;;  %p4524_p6 = pmov %p4519_p1 }
 0x207   : > { %p4525_p13 = pmov %p4519_p1 }
 0x208   : > { %3537 = dma.done.wait (%p4524_p6), [#allocation16], 2064  }
 0x209   : > { %3539 = vsyncadd (%p4525_p13), [#allocation16], 4294965232  ;;  %p4526_p4 = pmov %p4519_p1 }
 0x20a   : > { %p4527_p9 = pmov %p4519_p1 }
 0x20b   : > { %3541 = dma.done.wait (%p4526_p4), [#allocation19], 2080  }
 0x20c   : > { %3543 = vsyncadd (%p4527_p9), [#allocation19], 4294965216  ;;  %p4528_p0 = pmov %p4519_p1 }
 0x20e   : > { %3545 = dma.done.wait (%p4528_p0), [#allocation22], 32   ;;  %p4529_p7 = pmov %p4528_p0 }
 0x20f   : > { %p4530_p12 = pmov %p4528_p0 }
 0x210   : > { %3547 = vsyncadd (%p4529_p7), [#allocation22], 4294967264 }
 0x211   : > { %3549 = dma.done.wait (%p4530_p12), [#allocation25], 32   ;;  %p4531_p2 = pmov %p4528_p0 }
 0x212   : > { %p4532_p10 = pmov %p4528_p0 }
 0x213   : > { %3551 = vsyncadd (%p4531_p2), [#allocation25], 4294967264 }
 0x214   : > { %3553 = dma.done.wait (%p4532_p10), [#allocation28], 16   ;;  %p4533_p1 = pmov %p4528_p0 }
 0x215   : > { %v3605_v0 = vmov 0.0   ;;  %v3606_v1 = vmov 0   ;;  %vm3607_vm0 = vmmov 0   ;;  %v2892_v2 = vld [vmem:[#allocation11 + $0x4] ss:$8 sps:$4 sm:$0xff]   ;;  %v2910_v14 = vld [vmem:[#allocation8 + $0x18] sm:$0xff]   ;;  %v807_v31 = vlaneseq }
 0x216   : > { %3555 = vsyncadd (%p4533_p1), [#allocation28], 4294967280  ;;  %2567 = vmatprep.subr.bf16.mxu1 %v3605_v0  ;;  %929 = vmatprep.mubr.bf16.mxu0 %v3606_v1  ;;  %v2894_v3 = vld [vmem:[#allocation11] ss:$8 sps:$4 sm:$0xff]   ;;  %v2895_v4 = vld [vmem:[#allocation11 + $0x14] ss:$8 sps:$4 sm:$0xff]  }
 0x217   : > { %2583 = vmatprep.mubr.msk.bf16.mxu1 %vm3607_vm0, %v3605_v0  ;;  %897 = vmatprep.subr.bf16.mxu0 %v2892_v2  ;;  %v2897_v5 = vld [vmem:[#allocation11 + $0x10] ss:$8 sps:$4 sm:$0xff]   ;;  %v2898_v6 = vld [vmem:[#allocation8] sm:$0xff]   ;;  %v2902_v8 = vld [vmem:[#allocation8 + $0x8] sm:$0xff]   ;;  %v4259_v32 = vshrl.u32 %v807_v31, 7  ;;  %vm1064_vm1 = vcmask 261120  }
 0x218   : > { %898 = vmatpush1.bf16.msra.mxu0 %v2894_v3  ;;  %v2899_v7 = vld [vmem:[#allocation11 + $0x24] ss:$8 sps:$4 sm:$0xff]   ;;  %2568 = vmatpush3.bf16.msra.mxu1 %v2898_v6  ;;  %v2901_v9 = vld [vmem:[#allocation11 + $0x20] ss:$8 sps:$4 sm:$0xff]   ;;  %v2903_v10 = vld [vmem:[#allocation11 + $0x34] ss:$8 sps:$4 sm:$0xff]  }
 0x219   : > { %899 = vmatprep.subr.bf16.mxu0 %v2895_v4  ;;  %2569 = vmatprep.subr.bf16.mxu1 %v3605_v0  ;;  %v2906_v11 = vld [vmem:[#allocation8 + $0x10] sm:$0xff]   ;;  %v2909_v15 = vld [vmem:[#allocation11 + $0x40] ss:$8 sps:$4 sm:$0xff]   ;;  %v2923_v26 = vld [vmem:[#allocation8 + $0x38] sm:$0xff]   ;;  %v809_v33 = vsub.s32 0, %v4259_v32  ;;  %v813_v35 = vsub.s32 1, %v4259_v32 }
 0x21a   : > { %v2905_v12 = vld [vmem:[#allocation11 + $0x30] ss:$8 sps:$4 sm:$0xff]   ;;  %v2907_v13 = vld [vmem:[#allocation11 + $0x44] ss:$8 sps:$4 sm:$0xff]   ;;  %v2911_v16 = vld [vmem:[#allocation11 + $0x54] ss:$8 sps:$4 sm:$0xff]  }
 0x21b   : > { %v2914_v17 = vld [vmem:[#allocation8 + $0x20] sm:$0xff]   ;;  %v2913_v18 = vld [vmem:[#allocation11 + $0x50] ss:$8 sps:$4 sm:$0xff]   ;;  %v2918_v20 = vld [vmem:[#allocation8 + $0x28] sm:$0xff]   ;;  %vm1142_vm2 = vcmask 1043456   ;;  %vm1112_vm3 = vcmask 64512  }
 0x21c   : > { %900 = vmatpush1.bf16.msra.mxu0 %v2897_v5  ;;  %2570 = vmatpush3.bf16.msra.mxu1 %v2902_v8  ;;  %v2915_v19 = vld [vmem:[#allocation11 + $0x64] ss:$8 sps:$4 sm:$0xff]   ;;  %v2917_v21 = vld [vmem:[#allocation11 + $0x60] ss:$8 sps:$4 sm:$0xff]   ;;  %v2919_v22 = vld [vmem:[#allocation11 + $0x74] ss:$8 sps:$4 sm:$0xff]  }
 0x21d   : > { %901 = vmatprep.subr.bf16.mxu0 %v2899_v7  ;;  %2571 = vmatprep.subr.bf16.mxu1 %v3605_v0  ;;  %v2922_v23 = vld [vmem:[#allocation8 + $0x30] sm:$0xff]   ;;  %v4248_v28 = vld [vmem:[%s4187_s21 + $0x8] sm:$0xff]  ;;  %v805_v34 = vld [vmem:[#allocation12] sm:$0x3]  ;;  %s3608_s18 = smov 96   ;;  %s3609_s22 = smov 32  }
 0x21e   : > { %v2921_v24 = vld [vmem:[#allocation11 + $0x70] ss:$8 sps:$4 sm:$0xff]   ;;  %v810_v36 = vrot.slane %v805_v34, %v809_v33  ;;  %v814_v37 = vrot.slane %v805_v34, %v813_v35  ;;  %v2439_v39 = vld [vmem:[#allocation9] ss:$0 sm:$0xff]  ;;  %s3610_s28 = smov 64   ;;  %vm1585_vm4 = vcmask 523264  }
 0x21f   : > { %v787_v25 = vld [vmem:[%s4195_s5] sm:$0xff]  ;;  %vm1588_vm5 = vcmask 785408   ;;  %s4534_s20 = sld [smem:[#allocation44_spill]]  ;;  %s779_s7 = scalar_lea.vmem [#allocation29], %s2405_s25 }
 0x220   : > { %902 = vmatpush1.bf16.msra.mxu0 %v2901_v9  ;;  %2572 = vmatpush3.bf16.msra.mxu1 %v2906_v11  ;;  %v4245_v27 = vld [vmem:[%s4187_s21] sm:$0xff]  ;;  %v788_v29 = vpack.c.bf16 %v787_v25, %v787_v25  ;;  %s2141_s9 = sshll.u32 %s779_s7, 4  ;;  %s4535_s11 = sld [smem:[#allocation60_spill]]  ;;  %s4373_s9 = int_to_ptr.vmem [resolvable:$true] %s2141_s9 }
 0x221   : > { %903 = vmatprep.subr.bf16.mxu0 %v2903_v10  ;;  %2573 = vmatprep.subr.bf16.mxu1 %v3605_v0  ;;  %v949_v30 = vpack.c.bf16 %v4248_v28, %v4245_v27  ;;  %s2126_s4 = scalar_lea.sflag [#allocation5], %s4181_s16  ;;  %s3464_s21 = scalar_lea.vmem %s4373_s9, 256 }
 0x222   : > { %p3465_p5 = scmp.ne.s32.totalorder %s4373_s9, %s3464_s21  ;;  %p4536_p8 = scmp.ne.s32.totalorder %s4505_s24, 0 }
 0x223   : > { %s3611_s25 = smov [#allocation29]  }
 0x224   : > { %904 = vmatpush1.bf16.msra.mxu0 %v2905_v12  ;;  %2574 = vmatpush3.bf16.msra.mxu1 %v2910_v14  ;;  %p3466_p3 = pnand %p3465_p5, %p4536_p8  ;;  %s3468_s6 = sshll.u32 %s3611_s25, 4  ;;  %s3469_s6 = int_to_ptr.vmem [resolvable:$false] %s3468_s6 }
 0x225   : > { %905 = vmatprep.subr.bf16.mxu0 %v2907_v13  ;;  %2575 = vmatprep.subr.bf16.mxu1 %v3605_v0  ;;  %s2505_s1 = sshll.u32 %s4534_s20, 7  ;;  %s3470_s8 = scalar_lea.vmem %s3469_s6, 512 }
 0x226   : > { %s4371_s19 = scalar_lea.hbm %s4535_s11, %s2505_s1  ;;  %p3467_p11 = pneg %p3466_p3 }
 0x227   : > { %p3471_p6 = scmp.lt.s32.totalorder %s4373_s9, %s3469_s6  ;;  %p3472_p13 = scmp.lt.s32.totalorder %s3470_s8, %s3464_s21 }
 0x228   : > { %906 = vmatpush1.bf16.msra.mxu0 %v2909_v15  ;;  %2576 = vmatpush3.bf16.msra.mxu1 %v2914_v17 }
 0x229   : > { %907 = vmatprep.subr.bf16.mxu0 %v2911_v16  ;;  %2577 = vmatprep.subr.bf16.mxu1 %v3605_v0  ;;  %p3473_p4 = por %p3472_p13, %p3471_p6 }
 0x22b   : > { %p3474_p9 = pnand %p3473_p4, %p3467_p11 }
 0x22c   : > { %908 = vmatpush1.bf16.msra.mxu0 %v2913_v18  ;;  %2578 = vmatpush3.bf16.msra.mxu1 %v2918_v20 }
 0x22d   : > { %909 = vmatprep.subr.bf16.mxu0 %v2915_v19  ;;  %2579 = vmatprep.subr.bf16.mxu1 %v3605_v0 }
 0x230   : > { %910 = vmatpush1.bf16.msra.mxu0 %v2917_v21  ;;  %2580 = vmatpush3.bf16.msra.mxu1 %v2922_v23 }
 0x231   : > { %911 = vmatprep.subr.bf16.mxu0 %v2919_v22  ;;  %2581 = vmatprep.subr.bf16.mxu1 %v3605_v0 }
 0x234   : > { %912 = vmatpush1.bf16.msra.mxu0 %v2921_v24  ;;  %2582 = vmatpush3.bf16.msra.mxu1 %v2923_v26 }
 0x235   : > { %2611 = vmatprep.subr.bf16.mxu0 %v3605_v0  ;;  %2587 = vmatprep.subr.bf16.mxu1 %v3605_v0 }
 0x237   : > { %930 = vmatmul.mubr.bf16.vlgmr.msra.gmra.mrb[0].mxu0 %v788_v29  ;;  %2584 = vmatmul.mubr.bf16.vlgmr.msra.gmra.mrb[0].mxu1 %v949_v30 }
 0x238   : > { %2613 = vmatprep.mubr.msk.bf16.mxu0 %vm3607_vm0, %v3605_v0  ;;  %2589 = vmatprep.mubr.msk.bf16.mxu1 %vm3607_vm0, %v3605_v0 }
 0x30a   : > { %v931_v38 = vpop.f32.mrb[0].mxu0  ;;  %v1055_v44 = vpop.f32.mrb[0].mxu1 }
 0x30b   : > { %v932_v40 = vadd.f32 %v931_v38, %v810_v36  ;;  %v933_v41 = vpop.f32.mrb[1].mxu0  ;;  %v1056_v46 = vadd.f32 %v2439_v39, %v1055_v44  ;;  %v2585_v47 = vpop.f32.mrb[1].mxu1 }
 0x30c   : > { %v934_v42 = vadd.f32 %v933_v41, %v814_v37  ;;  %v935_v43 = vpop.f32.mrb[2].mxu0  ;;  %v1058_v49 = vpop.f32.mrb[2].mxu1 }
 0x30d   : > { %v936_v45 = vpop.f32.mrb[3].mxu0  ;;  %v1059_v50 = vadd.f32 %v2439_v39, %v1058_v49  ;;  %v2586_v51 = vpop.f32.mrb[3].mxu1  ;;  %v2510_v62 = vpack.c.bf16 %v932_v40, %v932_v40 }
 0x30e   : > { %v2508_v48 = vpack.c.bf16 %v934_v42, %v932_v40  ;;  %v4269_v54 = vpack.c.bf16 %v934_v42, %v934_v42 }
 0x30f   : > { %v1062_v53 = vpack.c.bf16 %v1059_v50, %v1056_v46 }
 0x310   : > { %v1069_v52 = vsel %vm1064_vm1, %v2508_v48, 0  ;;  %v1144_v55 = vsel %vm1142_vm2, %v4269_v54, 0 }
 0x311   : > { %2588 = vmatpush3.bf16.xpose.msra.mxu1 %v1069_v52 }
 0x312   : > { %2593 = vmatprep.subr.bf16.mxu1 %v3605_v0 }
 0x318   : > { %2590 = vmatmul.mubr.msk.bf16.vlgmr.msra.gmra.mrb[4].mxu1 %vm1064_vm1, %v1062_v53 }
 0x319   : > { %2594 = vmatpush3.bf16.msra.mxu1 %v1144_v55  ;;  %2595 = vmatprep.mubr.msk.bf16.mxu1 %vm3607_vm0, %v3605_v0 }
 0x31a   : > { %2599 = vmatprep.subr.bf16.mxu1 %v3605_v0 }
 0x3eb   : > { %v1105_v56 = vpop.f32.mrb[4].mxu1 }
 0x3ec   : > { %v2591_v57 = vpop.f32.mrb[5].mxu1  ;;  %v1113_v58 = vsel %vm1112_vm3, %v1105_v56, -inf }
 0x3ed   : > { %1114 = vmax.xlane.f32.xlu0 %v1113_v58  ;;  %v1108_v59 = vpop.f32.mrb[6].mxu1 }
 0x3ee   : > { %v2592_v60 = vpop.f32.mrb[7].mxu1  ;;  %v1116_v61 = vsel %vm1112_vm3, %v1108_v59, -inf }
 0x3f1   : > { %1117 = vmax.xlane.f32.xlu0 %v1116_v61 }
 0x407   : > { %1192 = vrot.lane.b32.xlu0 %v2510_v62, %s3608_s18 }
 0x40b   : > { %1438 = vrot.lane.b32.xlu0 %v2510_v62, %s3609_s22 }
 0x47a   : > { %v1115_v63 = vpop.xlane.xlu0 %1114 }
 0x47b   : > { %v1119_v2 = vsub.f32 %v1105_v56, %v1115_v63 }
 0x47d   : > { %v1121_v3 = vmul.f32 1.442695, %v1119_v2 }
 0x47e   : > { %v1118_v4 = vpop.xlane.xlu0 %1117 }
 0x47f   : > { %2972 = vpow2.f32 %v1121_v3  ;;  %v1120_v5 = vsub.f32 %v1108_v59, %v1118_v4 }
 0x481   : > { %v1123_v6 = vmul.f32 1.442695, %v1120_v5 }
 0x482   : > { %v1193_v14 = vpop.permute.xlu0 %1192 }
 0x483   : > { %2974 = vpow2.f32 %v1123_v6  ;;  %v1198_v23 = vsel %vm1064_vm1, %v1193_v14, 0 }
 0x486   : > { %v1439_v21 = vpop.permute.xlu0 %1438 }
 0x487   : > { %v1444_v25 = vsel %vm1064_vm1, %v1439_v21, 0 }
 0x489   : > { %v2973_v7 = vpop.eup %2972 }
 0x48a   : > { %v1125_v8 = vsel %vm1112_vm3, %v2973_v7, 0.0 }
 0x48b   : > { %1126 = vadd.xlane.f32.xlu1 %v1125_v8 }
 0x48d   : > { %v2975_v9 = vpop.eup %2974 }
 0x48e   : > { %v1128_v10 = vsel %vm1112_vm3, %v2975_v9, 0.0 }
 0x48f   : > { %1129 = vadd.xlane.f32.xlu1 %v1128_v10 }
 0x4a0   : > { %1188 = vrot.lane.b32.xlu1 %v1062_v53, %s3608_s18 }
 0x4a4   : > { %1315 = vrot.lane.b32.xlu1 %v2510_v62, %s3610_s28 }
 0x4a8   : > { %1313 = vrot.lane.b32.xlu1 %v1062_v53, %s3610_s28 }
 0x4ac   : > { %1436 = vrot.lane.b32.xlu1 %v1062_v53, %s3609_s22 }
 0x518   : > { %v1127_v11 = vpop.xlane.xlu1 %1126 }
 0x519   : > { %2976 = vrcp.f32 %v1127_v11 }
 0x51c   : > { %v1130_v12 = vpop.xlane.xlu1 %1129 }
 0x51d   : > { %2978 = vrcp.f32 %v1130_v12 }
 0x520   : > { %v1189_v13 = vpop.permute.xlu1 %1188 }
 0x523   : > { %v2977_v16 = vpop.eup %2976 }
 0x524   : > { %v1316_v15 = vpop.permute.xlu1 %1315  ;;  %v1133_v19 = vmul.f32 %v2977_v16, %v2973_v7 }
 0x525   : > { %v1321_v17 = vsel %vm1064_vm1, %v1316_v15, 0 }
 0x526   : > { %2612 = vmatpush3.bf16.xpose.msra.mxu0 %v1321_v17 }
 0x527   : > { %v2979_v18 = vpop.eup %2978  ;;  %2623 = vmatprep.subr.bf16.mxu0 %v3605_v0 }
 0x528   : > { %v1134_v20 = vmul.f32 %v2979_v18, %v2975_v9  ;;  %v1314_v24 = vpop.permute.xlu1 %1313 }
 0x52a   : > { %v1135_v22 = vpack.c.bf16 %v1134_v20, %v1133_v19 }
 0x52c   : > { %2596 = vmatmul.mubr.msk.bf16.vlgmr.msra.gmra.mrb[8].mxu1 %vm1112_vm3, %v1135_v22  ;;  %v1437_v26 = vpop.permute.xlu1 %1436 }
 0x52d   : > { %2600 = vmatpush3.bf16.xpose.msra.mxu1 %v1198_v23  ;;  %2614 = vmatmul.mubr.msk.bf16.vlgmr.msra.gmra.mrb[4].mxu0 %vm1064_vm1, %v1314_v24 }
 0x52e   : > { %2624 = vmatpush3.bf16.xpose.msra.mxu0 %v1444_v25  ;;  %2601 = vmatprep.mubr.msk.bf16.mxu1 %vm3607_vm0, %v3605_v0 }
 0x52f   : > { %2625 = vmatprep.mubr.msk.bf16.mxu0 %vm3607_vm0, %v3605_v0  ;;  %2605 = vmatprep.subr.bf16.mxu1 %v3605_v0 }
 0x530   : > { %2635 = vmatprep.subr.bf16.mxu0 %v3605_v0 }
 0x534   : > { %2602 = vmatmul.mubr.msk.bf16.vlgmr.msra.gmra.mrb[12].mxu1 %vm1064_vm1, %v1189_v13 }
 0x535   : > { %2626 = vmatmul.mubr.msk.bf16.vlgmr.msra.gmra.mrb[8].mxu0 %vm1064_vm1, %v1437_v26  ;;  %2607 = vmatprep.mubr.msk.bf16.mxu1 %vm3607_vm0, %v3605_v0 }
 0x536   : > { %2651 = vmatprep.mubr.msk.bf16.mxu0 %vm3607_vm0, %v3605_v0 }
 0x5ff   : > { %v4305_v29 = vpop.f32.mrb[8].mxu1 }
 0x600   : > { %v2597_v30 = vpop.f32.mrb[9].mxu1  ;;  %v1357_v31 = vpop.f32.mrb[4].mxu0 }
 0x601   : > { %v4307_v34 = vpop.f32.mrb[10].mxu1  ;;  %v2615_v36 = vpop.f32.mrb[5].mxu0  ;;  %v1364_v50 = vsel %vm1112_vm3, %v1357_v31, -inf }
 0x602   : > { %v2598_v37 = vpop.f32.mrb[11].mxu1  ;;  %v1360_v38 = vpop.f32.mrb[6].mxu0 }
 0x603   : > { %v2616_v39 = vpop.f32.mrb[7].mxu0  ;;  %v1367_v52 = vsel %vm1112_vm3, %v1360_v38, -inf }
 0x607   : > { %v1234_v40 = vpop.f32.mrb[12].mxu1 }
 0x608   : > { %v2603_v41 = vpop.f32.mrb[13].mxu1  ;;  %v1480_v42 = vpop.f32.mrb[8].mxu0  ;;  %v1241_v43 = vsel %vm1112_vm3, %v1234_v40, -inf }
 0x609   : > { %v2627_v44 = vpop.f32.mrb[9].mxu0  ;;  %1242 = vmax.xlane.f32.xlu0 %v1241_v43  ;;  %v1237_v45 = vpop.f32.mrb[14].mxu1  ;;  %v1487_v53 = vsel %vm1112_vm3, %v1480_v42, -inf }
 0x60a   : > { %v2604_v46 = vpop.f32.mrb[15].mxu1  ;;  %v1483_v47 = vpop.f32.mrb[10].mxu0  ;;  %v1244_v48 = vsel %vm1112_vm3, %v1237_v45, -inf }
 0x60b   : > { %v2628_v49 = vpop.f32.mrb[11].mxu0  ;;  %1245 = vmax.xlane.f32.xlu1 %v1244_v48  ;;  %v1490_v51 = vsel %vm1112_vm3, %v1483_v47, -inf }
 0x60d   : > { %1365 = vmax.xlane.f32.xlu0 %v1364_v50 }
 0x60f   : > { %1491 = vmax.xlane.f32.xlu1 %v1490_v51 }
 0x611   : > { %1368 = vmax.xlane.f32.xlu0 %v1367_v52 }
 0x615   : > { %1488 = vmax.xlane.f32.xlu0 %v1487_v53 }
 0x696   : > { %v1243_v55 = vpop.xlane.xlu0 %1242 }
 0x697   : > { %v1247_v2 = vsub.f32 %v1234_v40, %v1243_v55 }
 0x698   : > { %v1246_v56 = vpop.xlane.xlu1 %1245 }
 0x699   : > { %v1248_v3 = vsub.f32 %v1237_v45, %v1246_v56  ;;  %v1249_v8 = vmul.f32 1.442695, %v1247_v2 }
 0x69a   : > { %v1366_v57 = vpop.xlane.xlu0 %1365 }
 0x69b   : > { %v1370_v58 = vsub.f32 %v1357_v31, %v1366_v57  ;;  %v1251_v9 = vmul.f32 1.442695, %v1248_v3  ;;  %v2924_v57 = vld [vmem:[#allocation14] sm:$0xff]  }
 0x69c   : > { %v1492_v59 = vpop.xlane.xlu1 %1491  ;;  %2636 = vmatpush3.bf16.msra.mxu0 %v2924_v57  ;;  %v2938_v57 = vld [vmem:[#allocation17 + $0x20] ss:$8 sps:$4 sm:$0xff]  }
 0x69d   : > { %v1372_v60 = vmul.f32 1.442695, %v1370_v58  ;;  %v1494_v61 = vsub.f32 %v1483_v47, %v1492_v59  ;;  %v2925_v58 = vld [vmem:[#allocation14 + $0x8] sm:$0xff]   ;;  %2637 = vmatprep.subr.bf16.mxu0 %v3605_v0  ;;  %v2926_v59 = vld [vmem:[#allocation14 + $0x10] sm:$0xff]  }
 0x69e   : > { %v1369_v62 = vpop.xlane.xlu0 %1368 }
 0x69f   : > { %2980 = vpow2.f32 %v1372_v60  ;;  %v1371_v63 = vsub.f32 %v1360_v38, %v1369_v62  ;;  %v1497_v4 = vmul.f32 1.442695, %v1494_v61  ;;  %v2927_v60 = vld [vmem:[#allocation14 + $0x18] sm:$0xff]   ;;  %v2928_v61 = vld [vmem:[#allocation14 + $0x20] sm:$0xff]  }
 0x6a0   : > { %2638 = vmatpush3.bf16.msra.mxu0 %v2925_v58  ;;  %v2943_v58 = vld [vmem:[#allocation17 + $0x34] ss:$8 sps:$4 sm:$0xff]  }
 0x6a1   : > { %v1374_v5 = vmul.f32 1.442695, %v1371_v63  ;;  %2639 = vmatprep.subr.bf16.mxu0 %v3605_v0  ;;  %v2929_v63 = vld [vmem:[#allocation14 + $0x28] sm:$0xff]  }
 0x6a2   : > { %v1489_v6 = vpop.xlane.xlu0 %1488 }
 0x6a3   : > { %2982 = vpow2.f32 %v1374_v5  ;;  %v1493_v7 = vsub.f32 %v1480_v42, %v1489_v6  ;;  %v2930_v5 = vld [vmem:[#allocation14 + $0x30] sm:$0xff]  }
 0x6a4   : > { %2984 = vpow2.f32 %v1497_v4  ;;  %2640 = vmatpush3.bf16.msra.mxu0 %v2926_v59  ;;  %v2941_v59 = vld [vmem:[#allocation17 + $0x30] ss:$8 sps:$4 sm:$0xff]  }
 0x6a5   : > { %v1495_v10 = vmul.f32 1.442695, %v1493_v7  ;;  %2641 = vmatprep.subr.bf16.mxu0 %v3605_v0 }
 0x6a7   : > { %2986 = vpow2.f32 %v1495_v10 }
 0x6a8   : > { %2988 = vpow2.f32 %v1249_v8  ;;  %2642 = vmatpush3.bf16.msra.mxu0 %v2927_v60  ;;  %v2931_v8 = vld [vmem:[#allocation14 + $0x38] sm:$0xff]   ;;  %v2946_v60 = vld [vmem:[#allocation17 + $0x44] ss:$8 sps:$4 sm:$0xff]  }
 0x6a9   : > { %v2981_v11 = vpop.eup %2980  ;;  %2990 = vpow2.f32 %v1251_v9  ;;  %2643 = vmatprep.subr.bf16.mxu0 %v3605_v0 }
 0x6aa   : > { %v1376_v12 = vsel %vm1112_vm3, %v2981_v11, 0.0 }
 0x6ab   : > { %1377 = vadd.xlane.f32.xlu0 %v1376_v12 }
 0x6ac   : > { %2644 = vmatpush3.bf16.msra.mxu0 %v2928_v61  ;;  %v2944_v61 = vld [vmem:[#allocation17 + $0x40] ss:$8 sps:$4 sm:$0xff]  }
 0x6ad   : > { %v2983_v13 = vpop.eup %2982  ;;  %2645 = vmatprep.subr.bf16.mxu0 %v3605_v0 }
 0x6ae   : > { %v1379_v14 = vsel %vm1112_vm3, %v2983_v13, 0.0  ;;  %v2985_v15 = vpop.eup %2984 }
 0x6af   : > { %1380 = vadd.xlane.f32.xlu1 %v1379_v14  ;;  %v1502_v19 = vsel %vm1112_vm3, %v2985_v15, 0.0 }
 0x6b0   : > { %2646 = vmatpush3.bf16.msra.mxu0 %v2929_v63  ;;  %v2952_v63 = vld [vmem:[#allocation17 + $0x64] ss:$8 sps:$4 sm:$0xff]  }
 0x6b1   : > { %v2987_v16 = vpop.eup %2986  ;;  %2647 = vmatprep.subr.bf16.mxu0 %v3605_v0 }
 0x6b2   : > { %v2989_v17 = vpop.eup %2988  ;;  %v1499_v18 = vsel %vm1112_vm3, %v2987_v16, 0.0 }
 0x6b3   : > { %v2991_v20 = vpop.eup %2990  ;;  %1500 = vadd.xlane.f32.xlu0 %v1499_v18  ;;  %1503 = vadd.xlane.f32.xlu1 %v1502_v19  ;;  %v1253_v21 = vsel %vm1112_vm3, %v2989_v17, 0.0 }
 0x6b4   : > { %v1256_v22 = vsel %vm1112_vm3, %v2991_v20, 0.0  ;;  %2648 = vmatpush3.bf16.msra.mxu0 %v2930_v5  ;;  %v2956_v5 = vld [vmem:[#allocation20 + $0x40] sm:$0xff]  }
 0x6b5   : > { %2649 = vmatprep.subr.bf16.mxu0 %v3605_v0 }
 0x6b7   : > { %1254 = vadd.xlane.f32.xlu0 %v1253_v21  ;;  %1257 = vadd.xlane.f32.xlu1 %v1256_v22 }
 0x6b8   : > { %2650 = vmatpush3.bf16.msra.mxu0 %v2931_v8  ;;  %v2959_v8 = vld [vmem:[#allocation20 + $0x8] sm:$0xff]  }
 0x6b9   : > { %2545 = vmatprep.subr.bf16.mxu0 %v2956_v5 }
 0x6c8   : > { %1387 = vrot.lane.b32.xlu1 %v4269_v54, %s3610_s28 }
 0x6cc   : > { %1510 = vrot.lane.b32.xlu1 %v4269_v54, %s3609_s22 }
 0x6cd   : > { %1264 = vrot.lane.b32.xlu0 %v4269_v54, %s3608_s18 }
 0x738   : > { %v1378_v23 = vpop.xlane.xlu0 %1377 }
 0x73c   : > { %v1381_v24 = vpop.xlane.xlu1 %1380 }
 0x740   : > { %v1501_v25 = vpop.xlane.xlu0 %1500  ;;  %v1504_v26 = vpop.xlane.xlu1 %1503 }
 0x744   : > { %v1255_v30 = vpop.xlane.xlu0 %1254  ;;  %v1258_v31 = vpop.xlane.xlu1 %1257 }
 0x745   : > { %2992 = vrcp.f32 %v1255_v30 }
 0x746   : > { %2994 = vrcp.f32 %v1258_v31 }
 0x747   : > { %2996 = vrcp.f32 %v1381_v24 }
 0x748   : > { %v1265_v36 = vpop.permute.xlu0 %1264  ;;  %2998 = vrcp.f32 %v1378_v23  ;;  %v1388_v41 = vpop.permute.xlu1 %1387 }
 0x749   : > { %v1270_v37 = vsel %vm1142_vm2, %v1265_v36, 0  ;;  %3000 = vrcp.f32 %v1501_v25  ;;  %v1393_v44 = vsel %vm1142_vm2, %v1388_v41, 0 }
 0x74a   : > { %2606 = vmatpush3.bf16.msra.mxu1 %v1270_v37  ;;  %3002 = vrcp.f32 %v1504_v26 }
 0x74b   : > { %2617 = vmatprep.subr.bf16.mxu1 %v3605_v0 }
 0x74c   : > { %v1511_v48 = vpop.permute.xlu1 %1510 }
 0x74d   : > { %v1516_v52 = vsel %vm1142_vm2, %v1511_v48, 0  ;;  %v2935_v48 = vld [vmem:[#allocation17 + $0x10] ss:$8 sps:$4 sm:$0xff]  }
 0x74f   : > { %v2993_v38 = vpop.eup %2992 }
 0x750   : > { %v2995_v39 = vpop.eup %2994  ;;  %v1261_v40 = vmul.f32 %v2993_v38, %v2989_v17 }
 0x751   : > { %v1262_v54 = vmul.f32 %v2995_v39, %v2991_v20  ;;  %v2997_v43 = vpop.eup %2996  ;;  %v2458_v39 = vld [vmem:[#allocation15] ss:$0 sm:$0xff] }
 0x752   : > { %v2999_v45 = vpop.eup %2998  ;;  %v1385_v46 = vmul.f32 %v2997_v43, %v2983_v13 }
 0x753   : > { %v1263_v42 = vpack.c.bf16 %v1262_v54, %v1261_v40  ;;  %v1384_v47 = vmul.f32 %v2999_v45, %v2981_v11  ;;  %v3001_v49 = vpop.eup %3000  ;;  %v2932_v45 = vld [vmem:[#allocation17] ss:$8 sps:$4 sm:$0xff]  }
 0x754   : > { %v3003_v51 = vpop.eup %3002  ;;  %v1507_v53 = vmul.f32 %v3001_v49, %v2987_v16 }
 0x755   : > { %2608 = vmatmul.mubr.msk.bf16.vlgmr.msra.gmra.mrb[16].mxu1 %vm1112_vm3, %v1263_v42  ;;  %v1386_v50 = vpack.c.bf16 %v1385_v46, %v1384_v47  ;;  %v1508_v55 = vmul.f32 %v3003_v51, %v2985_v15  ;;  %v2934_v46 = vld [vmem:[#allocation17 + $0x4] ss:$8 sps:$4 sm:$0xff]   ;;  %v2937_v47 = vld [vmem:[#allocation17 + $0x14] ss:$8 sps:$4 sm:$0xff]  }
 0x756   : > { %2618 = vmatpush3.bf16.msra.mxu1 %v1393_v44  ;;  %2619 = vmatprep.mubr.msk.bf16.mxu1 %vm3607_vm0, %v3605_v0 }
 0x757   : > { %2629 = vmatprep.subr.bf16.mxu1 %v3605_v0  ;;  %v1509_v56 = vpack.c.bf16 %v1508_v55, %v1507_v53 }
 0x75d   : > { %2620 = vmatmul.mubr.msk.bf16.vlgmr.msra.gmra.mrb[20].mxu1 %vm1112_vm3, %v1386_v50 }
 0x75e   : > { %2630 = vmatpush3.bf16.msra.mxu1 %v1516_v52  ;;  %2631 = vmatprep.mubr.msk.bf16.mxu1 %vm3607_vm0, %v3605_v0 }
 0x75f   : > { %1856 = vmatprep.subr.bf16.mxu1 %v2934_v46 }
 0x765   : > { %2632 = vmatmul.mubr.msk.bf16.vlgmr.msra.gmra.mrb[24].mxu1 %vm1112_vm3, %v1509_v56  ;;  %v2940_v56 = vld [vmem:[#allocation17 + $0x24] ss:$8 sps:$4 sm:$0xff]  }
 0x766   : > { %1888 = vmatprep.mubr.bf16.mxu1 %v3606_v1  ;;  %1857 = vmatpush1.bf16.msra.mxu1 %v2932_v45 }
 0x767   : > { %1858 = vmatprep.subr.bf16.mxu1 %v2937_v47 }
 0x76a   : > { %1859 = vmatpush1.bf16.msra.mxu1 %v2935_v48 }
 0x76b   : > { %1860 = vmatprep.subr.bf16.mxu1 %v2940_v56 }
 0x76e   : > { %1861 = vmatpush1.bf16.msra.mxu1 %v2938_v57  ;;  %v2485_v57 = vld [vmem:[#allocation21] ss:$0 sm:$0xff] }
 0x76f   : > { %1862 = vmatprep.subr.bf16.mxu1 %v2943_v58 }
 0x772   : > { %1863 = vmatpush1.bf16.msra.mxu1 %v2941_v59 }
 0x773   : > { %1864 = vmatprep.subr.bf16.mxu1 %v2946_v60 }
 0x776   : > { %1865 = vmatpush1.bf16.msra.mxu1 %v2944_v61 }
 0x828   : > { %v1306_v62 = vpop.f32.mrb[16].mxu1 }
 0x829   : > { %v2609_v1 = vpop.f32.mrb[17].mxu1 }
 0x82a   : > { %v1309_v2 = vpop.f32.mrb[18].mxu1  ;;  %v2947_v1 = vld [vmem:[#allocation17 + $0x50] ss:$8 sps:$4 sm:$0xff]  }
 0x82b   : > { %v2877_v3 = vpack.i.bf16 %v1309_v2, %v1306_v62  ;;  %v2610_v4 = vpop.f32.mrb[19].mxu1  ;;  %v2949_v62 = vld [vmem:[#allocation17 + $0x54] ss:$8 sps:$4 sm:$0xff]   ;;  %v2950_v2 = vld [vmem:[#allocation17 + $0x60] ss:$8 sps:$4 sm:$0xff]  }
 0x82c   : > { %1866 = vmatprep.subr.bf16.mxu1 %v2949_v62  ;;  %v2953_v4 = vld [vmem:[#allocation17 + $0x70] ss:$8 sps:$4 sm:$0xff]  }
 0x82d   : > { %2878 = vrot.lane.b32.xlu1 %v2877_v3, %s3609_s22  ;;  %1867 = vmatpush1.bf16.msra.mxu1 %v2947_v1  ;;  %v2955_v3 = vld [vmem:[#allocation17 + $0x74] ss:$8 sps:$4 sm:$0xff]  }
 0x82e   : > { %1868 = vmatprep.subr.bf16.mxu1 %v2952_v63 }
 0x830   : > { %v1429_v6 = vpop.f32.mrb[20].mxu1 }
 0x831   : > { %v2621_v7 = vpop.f32.mrb[21].mxu1  ;;  %1869 = vmatpush1.bf16.msra.mxu1 %v2950_v2 }
 0x832   : > { %v1432_v9 = vpop.f32.mrb[22].mxu1  ;;  %1870 = vmatprep.subr.bf16.mxu1 %v2955_v3  ;;  %v2958_v7 = vld [vmem:[#allocation20 + $0x48] sm:$0xff]  }
 0x833   : > { %v2882_v10 = vpack.i.bf16 %v1432_v9, %v1429_v6  ;;  %v2622_v11 = vpop.f32.mrb[23].mxu1  ;;  %v2957_v6 = vld [vmem:[#allocation20] sm:$0xff]   ;;  %v2960_v9 = vld [vmem:[#allocation20 + $0x50] sm:$0xff]  }
 0x834   : > { %v2962_v11 = vld [vmem:[#allocation20 + $0x58] sm:$0xff]  }
 0x835   : > { %2883 = vrot.lane.b32.xlu0 %v2882_v10, %s3610_s28  ;;  %1871 = vmatpush1.bf16.msra.mxu1 %v2953_v4  ;;  %v2961_v10 = vld [vmem:[#allocation20 + $0x10] sm:$0xff]  }
 0x838   : > { %v1552_v12 = vpop.f32.mrb[24].mxu1 }
 0x839   : > { %v2633_v13 = vpop.f32.mrb[25].mxu1 }
 0x83a   : > { %v1555_v14 = vpop.f32.mrb[26].mxu1  ;;  %v2964_v13 = vld [vmem:[#allocation20 + $0x60] sm:$0xff]  }
 0x83b   : > { %v2887_v15 = vpack.i.bf16 %v1555_v14, %v1552_v12  ;;  %v2634_v16 = vpop.f32.mrb[27].mxu1  ;;  %v2963_v12 = vld [vmem:[#allocation20 + $0x18] sm:$0xff]   ;;  %v2965_v14 = vld [vmem:[#allocation20 + $0x20] sm:$0xff]  }
 0x83d   : > { %2888 = vrot.lane.b32.xlu1 %v2887_v15, %s3608_s18  ;;  %v2966_v15 = vld [vmem:[#allocation20 + $0x68] sm:$0xff]  }
 0x89f   : > { %v2879_v17 = vpop.permute.xlu1 %2878 }
 0x8a0   : > { %v2881_v19 = vunpack.i.h.bf16 %v2879_v17  ;;  %v2880_v20 = vunpack.i.l.bf16 %v2879_v17 }
 0x8a2   : > { %v1584_v23 = vsel %vm1064_vm1, %v4307_v34, %v2881_v19  ;;  %v1583_v24 = vsel %vm1064_vm1, %v4305_v29, %v2880_v20 }
 0x8a7   : > { %v2884_v18 = vpop.permute.xlu0 %2883 }
 0x8a8   : > { %v2886_v0 = vunpack.i.h.bf16 %v2884_v18  ;;  %v2885_v21 = vunpack.i.l.bf16 %v2884_v18 }
 0x8aa   : > { %v1587_v30 = vsel %vm1585_vm4, %v1584_v23, %v2886_v0  ;;  %v1586_v31 = vsel %vm1585_vm4, %v1583_v24, %v2885_v21  ;;  %v2467_v23 = vld [vmem:[#allocation23] ss:$0 sm:$0xff] }
 0x8af   : > { %v2889_v22 = vpop.permute.xlu1 %2888 }
 0x8b0   : > { %v2891_v25 = vunpack.i.h.bf16 %v2889_v22  ;;  %v2890_v26 = vunpack.i.l.bf16 %v2889_v22 }
 0x8b2   : > { %v1590_v36 = vsel %vm1588_vm5, %v1587_v30, %v2891_v25  ;;  %v1589_v37 = vsel %vm1588_vm5, %v1586_v31, %v2890_v26  ;;  %v2468_v30 = vld [vmem:[#allocation24] ss:$0 sm:$0xff] }
 0x8b3   : > { %v1591_v38 = vpack.c.bf16 %v1590_v36, %v1589_v37 }
 0x8b5   : > { %2652 = vmatmul.mubr.bf16.vlgmr.msra.gmra.mrb[12].mxu0 %v1591_v38 }
 0x8b6   : > { %2546 = vmatpush3.bf16.msra.mxu0 %v2957_v6 }
 0x8b7   : > { %2547 = vmatprep.subr.bf16.mxu0 %v2958_v7 }
 0x8ba   : > { %2548 = vmatpush3.bf16.msra.mxu0 %v2959_v8 }
 0x8bb   : > { %2549 = vmatprep.subr.bf16.mxu0 %v2960_v9 }
 0x8be   : > { %2550 = vmatpush3.bf16.msra.mxu0 %v2961_v10 }
 0x8bf   : > { %2551 = vmatprep.subr.bf16.mxu0 %v2962_v11 }
 0x8c2   : > { %2552 = vmatpush3.bf16.msra.mxu0 %v2963_v12 }
 0x8c3   : > { %2553 = vmatprep.subr.bf16.mxu0 %v2964_v13 }
 0x8c6   : > { %2554 = vmatpush3.bf16.msra.mxu0 %v2965_v14 }
 0x8c7   : > { %2555 = vmatprep.subr.bf16.mxu0 %v2966_v15 }
 0x988   : > { %v1697_v40 = vpop.f32.mrb[12].mxu0 }
 0x989   : > { %v1698_v54 = vadd.f32 %v2458_v39, %v1697_v40  ;;  %v2653_v41 = vpop.f32.mrb[13].mxu0  ;;  %v2968_v40 = vld [vmem:[#allocation20 + $0x70] sm:$0xff]  }
 0x98a   : > { %v1700_v42 = vpop.f32.mrb[14].mxu0  ;;  %v2970_v41 = vld [vmem:[#allocation20 + $0x78] sm:$0xff]  }
 0x98b   : > { %v1701_v43 = vadd.f32 %v2458_v39, %v1700_v42  ;;  %v2654_v44 = vpop.f32.mrb[15].mxu0  ;;  %v1704_v34 = vadd.f32 %v1698_v54, %v4245_v27  ;;  %v2967_v39 = vld [vmem:[#allocation20 + $0x28] sm:$0xff]   ;;  %v2969_v54 = vld [vmem:[#allocation20 + $0x30] sm:$0xff]   ;;  %v2971_v42 = vld [vmem:[#allocation20 + $0x38] sm:$0xff]  }
 0x98c   : > { %2556 = vmatpush3.bf16.msra.mxu0 %v2967_v39 }
 0x98d   : > { %1706 = vadd.xlane.f32.xlu0 %v1704_v34  ;;  %v1705_v29 = vadd.f32 %v1701_v43, %v4248_v28  ;;  %2557 = vmatprep.subr.bf16.mxu0 %v2968_v40  ;;  %v1764_v43 = vld [vmem:[#allocation18] sm:$0x3] }
 0x98e   : > { %v1769_v44 = vrot.slane %v1764_v43, %v809_v33 }
 0x98f   : > { %1708 = vadd.xlane.f32.xlu1 %v1705_v29 }
 0x990   : > { %2558 = vmatpush3.bf16.msra.mxu0 %v2969_v54 }
 0x991   : > { %2559 = vmatprep.subr.bf16.mxu0 %v2970_v41 }
 0x994   : > { %2560 = vmatpush3.bf16.msra.mxu0 %v2971_v42 }
 0xa1a   : > { %v1707_v49 = vpop.xlane.xlu0 %1706 }
 0xa1b   : > { %v1711_v50 = vmul.f32 0.0078125, %v1707_v49 }
 0xa1c   : > { %v1709_v51 = vpop.xlane.xlu1 %1708 }
 0xa1d   : > { %v1713_v52 = vsub.f32 %v1704_v34, %v1711_v50  ;;  %v1712_v53 = vmul.f32 0.0078125, %v1709_v51  ;;  %v1773_v34 = vrot.slane %v1764_v43, %v813_v35 }
 0xa1f   : > { %v4356_v55 = vsub.f32 %v1705_v29, %v1712_v53  ;;  %v1715_v27 = vmul.f32 %v1713_v52, %v1713_v52 }
 0xa21   : > { %1717 = vadd.xlane.f32.xlu0 %v1715_v27  ;;  %v1716_v28 = vmul.f32 %v4356_v55, %v4356_v55 }
 0xa25   : > { %1719 = vadd.xlane.f32.xlu0 %v1716_v28 }
 0xaae   : > { %v1718_v16 = vpop.xlane.xlu0 %1717 }
 0xaaf   : > { %v1721_v17 = vmul.f32 0.0078125, %v1718_v16 }
 0xab1   : > { %v1723_v18 = vadd.f32 1e-05, %v1721_v17  ;;  %v2502_v17 = vld [vmem:[#allocation26] ss:$0 sm:$0xff] }
 0xab2   : > { %v1720_v19 = vpop.xlane.xlu0 %1719 }
 0xab3   : > { %3004 = vrsqrt.f32 %v1723_v18  ;;  %v1722_v20 = vmul.f32 0.0078125, %v1720_v19 }
 0xab5   : > { %v1724_v0 = vadd.f32 1e-05, %v1722_v20  ;;  %v2503_v20 = vld [vmem:[#allocation27] ss:$0 sm:$0xff] }
 0xab7   : > { %3006 = vrsqrt.f32 %v1724_v0 }
 0xabd   : > { %v3005_v21 = vpop.eup %3004 }
 0xabe   : > { %v1727_v22 = vmul.f32 %v3005_v21, %v1713_v52 }
 0xac0   : > { %v1736_v26 = vmul.f32 %v2467_v23, %v1727_v22 }
 0xac1   : > { %v3007_v24 = vpop.eup %3006 }
 0xac2   : > { %v1728_v25 = vmul.f32 %v3007_v24, %v4356_v55  ;;  %v1745_v36 = vadd.f32 %v2468_v30, %v1736_v26 }
 0xac4   : > { %v1737_v31 = vmul.f32 %v2467_v23, %v1728_v25 }
 0xac6   : > { %v1746_v37 = vadd.f32 %v2468_v30, %v1737_v31 }
 0xac8   : > { %v1747_v38 = vpack.c.bf16 %v1746_v37, %v1745_v36 }
 0xaca   : > { %1889 = vmatmul.mubr.bf16.vlgmr.msra.gmra.mrb[28].mxu1 %v1747_v38 }
 0xb9d   : > { %v1890_v29 = vpop.f32.mrb[28].mxu1 }
 0xb9e   : > { %v1891_v45 = vadd.f32 %v1890_v29, %v1769_v44  ;;  %v1892_v46 = vpop.f32.mrb[29].mxu1 }
 0xb9f   : > { %v1893_v47 = vadd.f32 %v1892_v46, %v1773_v34  ;;  %v1894_v48 = vpop.f32.mrb[30].mxu1 }
 0xba0   : > { %v1895_v49 = vadd.f32 %v1894_v48, %v1769_v44  ;;  %v1896_v50 = vpop.f32.mrb[31].mxu1  ;;  %v1899_v52 = vmax.f32 %v1891_v45, 0.0 }
 0xba1   : > { %v1897_v51 = vadd.f32 %v1896_v50, %v1773_v34  ;;  %v1900_v55 = vmax.f32 %v1893_v47, 0.0 }
 0xba2   : > { %v1901_v53 = vmax.f32 %v1895_v49, 0.0 }
 0xba3   : > { %v1902_v27 = vmax.f32 %v1897_v51, 0.0 }
 0xba4   : > { %v1903_v28 = vpack.c.bf16 %v1901_v53, %v1899_v52 }
 0xba5   : > { %v1904_v56 = vpack.c.bf16 %v1902_v27, %v1900_v55 }
 0xba7   : > { %2072 = vmatprep.mubr.bf16.mxu0 %v1904_v56 }
 0xba8   : > { %2073 = vmatmul.mubr.bf16.vlgmr.msra.gmra.mrb[16].mxu0 %v1903_v28 }
 0xc7b   : > { %v2561_v33 = vpop.f32.mrb[16].mxu0 }
 0xc7c   : > { %v2562_v32 = vpop.f32.mrb[17].mxu0 }
 0xc7d   : > { %v2563_v35 = vadd.f32 %v2562_v32, %v2561_v33  ;;  %v2564_v58 = vpop.f32.mrb[18].mxu0 }
 0xc7e   : > { %v2565_v59 = vpop.f32.mrb[19].mxu0 }
 0xc7f   : > { %v2075_v60 = vadd.f32 %v2563_v35, %v2485_v57  ;;  %v2566_v61 = vadd.f32 %v2565_v59, %v2564_v58 }
 0xc81   : > { %v2078_v62 = vadd.f32 %v2566_v61, %v2485_v57  ;;  %v2081_v1 = vadd.f32 %v2075_v60, %v1745_v36 }
 0xc83   : > { %2083 = vadd.xlane.f32.xlu0 %v2081_v1  ;;  %v2082_v63 = vadd.f32 %v2078_v62, %v1746_v37 }
 0xc85   : > { %2085 = vadd.xlane.f32.xlu1 %v2082_v63 }
 0xd10   : > { %v2084_v2 = vpop.xlane.xlu0 %2083 }
 0xd11   : > { %v2087_v3 = vmul.f32 0.0078125, %v2084_v2 }
 0xd12   : > { %v2086_v4 = vpop.xlane.xlu1 %2085 }
 0xd13   : > { %v2089_v5 = vsub.f32 %v2081_v1, %v2087_v3  ;;  %v2088_v6 = vmul.f32 0.0078125, %v2086_v4 }
 0xd15   : > { %v2090_v7 = vsub.f32 %v2082_v63, %v2088_v6  ;;  %v2091_v8 = vmul.f32 %v2089_v5, %v2089_v5 }
 0xd17   : > { %2093 = vadd.xlane.f32.xlu0 %v2091_v8  ;;  %v2092_v9 = vmul.f32 %v2090_v7, %v2090_v7 }
 0xd19   : > { %2095 = vadd.xlane.f32.xlu1 %v2092_v9 }
 0xda4   : > { %v2094_v10 = vpop.xlane.xlu0 %2093 }
 0xda5   : > { %v2097_v11 = vmul.f32 0.0078125, %v2094_v10 }
 0xda6   : > { %v2096_v12 = vpop.xlane.xlu1 %2095 }
 0xda7   : > { %v2099_v13 = vadd.f32 1e-05, %v2097_v11  ;;  %v2098_v14 = vmul.f32 0.0078125, %v2096_v12 }
 0xda9   : > { %3008 = vrsqrt.f32 %v2099_v13  ;;  %v2100_v15 = vadd.f32 1e-05, %v2098_v14 }
 0xdab   : > { %3010 = vrsqrt.f32 %v2100_v15 }
 0xdb3   : > { %v3009_v16 = vpop.eup %3008 }
 0xdb4   : > { %v2103_v18 = vmul.f32 %v3009_v16, %v2089_v5 }
 0xdb5   : > { %v3011_v19 = vpop.eup %3010 }
 0xdb6   : > { %v2112_v0 = vmul.f32 %v2502_v17, %v2103_v18  ;;  %v2104_v21 = vmul.f32 %v3011_v19, %v2090_v7 }
 0xdb8   : > { %v2121_v22 = vadd.f32 %v2503_v20, %v2112_v0  ;;  %v2113_v23 = vmul.f32 %v2502_v17, %v2104_v21 }
 0xdba   : > { %v2122_v24 = vadd.f32 %v2503_v20, %v2113_v23  ;;  %2123 = vst [vmem:[%s779_s7] sm:$0xff] %v2121_v22 }
 0xdbc   : > { %2124 = vst [vmem:[%s779_s7 + $0x8] sm:$0xff] %v2122_v24 }
 0xdbd   : > { %3477 = shalt.err (!%p3474_p9)
}
 0xdbe   : > { %s3478_s10 = scalar_lea.hbm %s4371_s19, 256  ;;  %s3482_s18 = scalar_lea.hbm %s4535_s11, 512 }
 0xdbf   : > { %p3479_p0 = scmp.ne.s32.totalorder %s4371_s19, %s3478_s10  ;;  %p3483_p2 = scmp.lt.u32.totalorder %s4371_s19, %s4535_s11 }
 0xdc0   : > { %p3484_p10 = scmp.lt.u32.totalorder %s3482_s18, %s3478_s10  ;;  %p3486_p5 = scmp.lt.u32.totalorder %s3478_s10, %s4371_s19 }
 0xdc1   : > { %p3480_p7 = pnand %p3479_p0, %p4536_p8 }
 0xdc2   : > { %p3485_p1 = por %p3484_p10, %p3483_p2 }
 0xdc3   : > { %p3481_p12 = pneg %p3480_p7 }
 0xdc4   : > { %p3487_p3 = por %p3486_p5, %p3485_p1 }
 0xdc6   : > { %p3488_p11 = pnand %p3487_p3, %p3481_p12 }
 0xdc8   : > { %3491 = shalt.err (!%p3488_p11)
}
 0xdc9   : > { %s3612_s20 = smov 128   ;;  %s3613_s1 = smov 256  }
 0xdca   : > { %s3614_s7 = smov 8  }
 0xdcb   : > { %2715 = dma.vmem_to_hbm [thread:$0]  (%p4536_p8), %s4373_s9, 256, %s4371_s19, %s2126_s4, %s3612_s20, %s3613_s1, %s3614_s7  }
 0xdcc PF: > { %s4537_s0 = sld [smem:[#allocation41_spill]]  ;;  %p4538_p6 = scmp.ne.s32.totalorder %s4506_s23, 0 }
 0xdcd   : > { %p4539_p13 = scmp.ge.s32.totalorder %s3582_s26, 2 }
 0xdcf   : > { %p2768_p4 = pnand %p4539_p13, %p4538_p6 }
 0xdd2   : > { %s2156_s27 = sand.u32 1, %s4537_s0  }
 0xdd3   : > { %s2157_s21 = scalar_lea.sflag [#allocation5], %s2156_s27 }
 0xdd4   : > { %3557 = dma.done.wait (!%p2768_p4), %s2157_s21, 256  }
 0xdd5   : > { %3559 = vsyncadd (!%p2768_p4), %s2157_s21, 4294967040  ;;  %s42_s26 = sadd.s32 1, %s3582_s26   ;;  %s4540_s21 = sld [smem:[#allocation42_spill]] }
 0xdd6   : > { %p39_p9 = scmp.ge.s32.totalorder %s42_s26, 4   ;;  %s4541_s22 = sld [smem:[#allocation43_spill]] }
 0xdd7   : > { %s4542_s24 = sld [smem:[#allocation45_spill]]  ;;  %s4543_s23 = smov %s4091_s3 }
 0xdd8   : > { %s4544_s25 = smov %s4546_s30  ;;  %41 = sbr.rel (!%p39_p9) target bundleno = 29 (0x1d), region = 202 }
 0xddf   :  { %2162 = vsyncpa [#allocation4], 1 }
 0xde0   :  { %2164 = vsyncpa [#allocation4 + $0x1], 1 }
 0xde1   :  { %2165 = vsyncpa [#allocation7], 1 }
 0xde2   :  { %2167 = vsyncpa [#allocation7 + $0x1], 1 }
 0xde3   :  { %2168 = vsyncpa [#allocation10], 1 }
 0xde4   :  { %2169 = vsyncpa [#allocation13], 1 }
 0xde5   :  { %2170 = vsyncpa [#allocation16], 1 }
 0xde6   :  { %2171 = vsyncpa [#allocation19], 1 }
 0xde7   :  { %2172 = vsyncpa [#allocation22], 1 }
 0xde8   :  { %2173 = vsyncpa [#allocation25], 1 }
 0xde9   :  { %2174 = vsyncpa [#allocation28], 1 }
 0xdea   :  { %2175 = vsyncpa [#allocation5], 1 }
 0xdeb   :  { %2177 = vsyncpa [#allocation5 + $0x1], 1 }

</bundles_post_ra>
